<compile_context>
chip_gen: v6e
topology: v6e:2x2x1
jax: 0.10.0
libtpu: 0.0.40
codegen_flags: <defaults>
</compile_context>

<pallas_src>
import jax
import jax.numpy as jnp
import numpy as np
from jax.experimental import pallas as pl
from jax.experimental.pallas import tpu as pltpu  # noqa: F401


def _layernorm(x, gamma, beta, eps=1e-5):
    # PyTorch LayerNorm: biased variance, eps inside rsqrt.
    mu = jnp.mean(x, axis=-1, keepdims=True)
    var = jnp.mean((x - mu) ** 2, axis=-1, keepdims=True)
    return (x - mu) * jax.lax.rsqrt(var + eps) * gamma + beta


def _make_kernel(B, T, C, E, H, n_heads, hd):
    f32 = jnp.float32
    BT = B * T

    def kernel(x_ref, wqkv_ref, wp_ref, w1_ref, w2_ref, wc_ref,
               vw_ref, vc_ref, o_ref):
        x = x_ref[...]                                    # (B*T, C)

        # Packed (1, .) parameters: row slices of the two stacked slabs.
        vw = vw_ref[...]                                  # (2, max(3E, H))
        vc = vc_ref[...]                                  # (7, C)
        bqkv = vw[0:1, :3 * E]
        b1 = vw[1:2, :H]
        bp, g1, be1 = vc[0:1, :], vc[1:2, :], vc[2:3, :]
        b2, g2, be2, bc = vc[3:4, :], vc[4:5, :], vc[5:6, :], vc[6:7, :]

        # ---- QKV: single unbatched MXU dot (Q scale folded into weights) ---
        qkv = jnp.dot(x, wqkv_ref[...], preferred_element_type=f32) + bqkv   # (BT, 3E)

        # Head split: static lane slices + leading-axis stack; the reshape
        # only splits/merges leading dims (lane dim stays hd).
        def split_heads(off):
            hs = [qkv[:, off + h * hd: off + (h + 1) * hd] for h in range(n_heads)]
            return jnp.stack(hs, axis=0).reshape(n_heads * B, T, hd)

        q = split_heads(0)
        k = split_heads(E)
        v = split_heads(2 * E)

        # ---- Attention, batched over n_heads*B independent problems --------
        s = jnp.einsum('bqd,bkd->bqk', q, k, preferred_element_type=f32)
        s = s - jnp.max(s, axis=-1, keepdims=True)
        p = jnp.exp(s)
        p = p * pl.reciprocal(jnp.sum(p, axis=-1, keepdims=True), approx=True)
        o = jnp.einsum('bqk,bkd->bqd', p, v, preferred_element_type=f32)

        # ---- Output projection (== concat-then-proj; head sum in f32) ------
        o = o.reshape(n_heads, BT, hd)
        wp = wp_ref[...]                                  # (E, C)
        attn = jnp.dot(o[0], wp[:hd, :], preferred_element_type=f32)
        for h in range(1, n_heads):                       # static unroll, small
            attn = attn + jnp.dot(o[h], wp[h * hd:(h + 1) * hd, :],
                                  preferred_element_type=f32)
        attn = attn + bp

        # ---- Residual + LayerNorm 1 ----
        h1 = _layernorm(x + attn, g1, be1)

        # ---- FeedForward: Linear -> GELU (tanh, EUP slot) -> Linear ----
        ff = jnp.dot(h1, w1_ref[...], preferred_element_type=f32) + b1
        ff = jax.nn.gelu(ff, approximate=True)
        ff = jnp.dot(ff, w2_ref[...], preferred_element_type=f32) + b2

        # ---- Residual + LayerNorm 2 ----
        h2 = _layernorm(h1 + ff, g2, be2)

        # ---- 1x1 Conv1d over channels == per-token linear ----
        out = jnp.dot(h2, wc_ref[...], preferred_element_type=f32) + bc
        o_ref[...] = out.astype(o_ref.dtype)

    return kernel


def transformer_block(x, params, n_heads):
    B, T, C = x.shape
    E = params["wq"].shape[1]
    assert E % n_heads == 0
    hd = E // n_heads
    H = params["w1"].shape[1]
    scale = 1.0 / float(np.sqrt(hd))

    # --- wrapper-side packing: pure XLA layout plumbing, free ---
    # Fused QKV weights/bias with 1/sqrt(hd) folded into the Q block.
    wqkv = jnp.concatenate([params["wq"] * scale, params["wk"], params["wv"]], axis=1)
    bqkv = jnp.concatenate([params["bq"] * scale, params["bk"], params["bv"]], axis=1)

    # Pack the nine (1, .) vectors into two slabs (fewer DMAs / VMEM buffers).
    w = max(3 * E, H)
    vecw = jnp.concatenate([jnp.pad(bqkv, ((0, 0), (0, w - 3 * E))),
                            jnp.pad(params["b1"], ((0, 0), (0, w - H)))], axis=0)
    vecc = jnp.concatenate([params["bp"], params["g1"], params["be1"],
                            params["b2"], params["g2"], params["be2"],
                            params["bc"]], axis=0)

    kernel = _make_kernel(B, T, C, E, H, n_heads, hd)
    # Single gridless step; whole problem fits comfortably in VMEM on every
    # generation.  For larger B*T, add a ("parallel",) batch grid axis so the
    # second TensorCore on v7x is used (pointless at B*T=32).
    out2 = pl.pallas_call(
        kernel,
        out_shape=jax.ShapeDtypeStruct((B * T, C), x.dtype),
    )(x.reshape(B * T, C), wqkv, params["wp"], params["w1"], params["w2"],
      params["wc"], vecw, vecc)
    return out2.reshape(B, T, C)


def transformer_block_ref(x, params, n_heads):
    """Pure-JAX reference (mirrors the PyTorch forward, exact erf GELU)."""
    hp = jax.lax.Precision.HIGHEST
    E = params["wq"].shape[1]
    hd = E // n_heads
    q = jnp.einsum("btc,ce->bte", x, params["wq"], precision=hp) + params["bq"]
    k = jnp.einsum("btc,ce->bte", x, params["wk"], precision=hp) + params["bk"]
    v = jnp.einsum("btc,ce->bte", x, params["wv"], precision=hp) + params["bv"]
    outs = []
    for h in range(n_heads):
        sl = slice(h * hd, (h + 1) * hd)
        wei = jnp.einsum("btd,bsd->bts", q[..., sl], k[..., sl],
                         precision=hp) / (hd ** 0.5)
        wei = jax.nn.softmax(wei, axis=-1)
        outs.append(jnp.einsum("bts,bsd->btd", wei, v[..., sl], precision=hp))
    attn = jnp.concatenate(outs, -1)
    attn = jnp.einsum("bte,ec->btc", attn, params["wp"], precision=hp) + params["bp"]
    h1 = _layernorm(x + attn, params["g1"], params["be1"])
    ff = jnp.einsum("btc,ch->bth", h1, params["w1"], precision=hp) + params["b1"]
    ff = jax.nn.gelu(ff, approximate=False)
    ff = jnp.einsum("bth,hc->btc", ff, params["w2"], precision=hp) + params["b2"]
    h2 = _layernorm(h1 + ff, params["g2"], params["be2"])
    return jnp.einsum("btc,cd->btd", h2, params["wc"], precision=hp) + params["bc"]


def init_params(key, in_embd, n_embd, ffwd_mul):
    C, E, H = in_embd, n_embd, ffwd_mul * in_embd
    ks = jax.random.split(key, 12)

    def u(k, shape, fan_in):
        bound = 1.0 / np.sqrt(fan_in)
        return jax.random.uniform(k, shape, jnp.float32, -bound, bound)

    params = {
        # fused per-head q/k/v weights (column block h == head h), torch layout W.T
        "wq": u(ks[0], (C, E), C), "bq": u(ks[1], (1, E), C),
        "wk": u(ks[2], (C, E), C), "bk": u(ks[3], (1, E), C),
        "wv": u(ks[4], (C, E), C), "bv": u(ks[5], (1, E), C),
        "wp": u(ks[6], (E, C), E), "bp": u(ks[7], (1, C), E),
        "g1": jnp.ones((1, C), jnp.float32), "be1": jnp.zeros((1, C), jnp.float32),
        "w1": u(ks[8], (C, H), C), "b1": u(ks[9], (1, H), C),
        "w2": u(ks[10], (H, C), H), "b2": u(ks[11], (1, C), H),
        "g2": jnp.ones((1, C), jnp.float32), "be2": jnp.zeros((1, C), jnp.float32),
        # conv.weight[:, :, 0].T  and conv.bias
        "wc": u(jax.random.fold_in(key, 100), (C, C), C),
        "bc": u(jax.random.fold_in(key, 101), (1, C), C),
    }
    return params


if __name__ == "__main__":
    # TransformerBlock(in_embd=32, head_size=32, n_heads=4, ffwd_mul=4)
    B, T = 2, 16
    in_embd, head_size, n_heads, ffwd_mul = 32, 32, 4, 4

    key = jax.random.PRNGKey(0)
    kx, kp = jax.random.split(key)
    x = jax.random.normal(kx, (B, T, in_embd), jnp.float32)
    params = init_params(kp, in_embd, head_size, ffwd_mul)

    out = transformer_block(x, params, n_heads)
    out = jax.block_until_ready(out)

    ref = jax.block_until_ready(transformer_block_ref(x, params, n_heads))
    np.testing.assert_allclose(np.asarray(out), np.asarray(ref),
                               rtol=2e-2, atol=2e-2)
    print("KERNEL_OK")
</pallas_src>

<mosaic_0001>
module attributes {stable_mosaic.version = 11 : i64} {
  func.func @kernel(%arg0: memref<32x32xf32, #tpu.memory_space<vmem>>, %arg1: memref<32x96xf32, #tpu.memory_space<vmem>>, %arg2: memref<32x32xf32, #tpu.memory_space<vmem>>, %arg3: memref<32x128xf32, #tpu.memory_space<vmem>>, %arg4: memref<128x32xf32, #tpu.memory_space<vmem>>, %arg5: memref<32x32xf32, #tpu.memory_space<vmem>>, %arg6: memref<2x128xf32, #tpu.memory_space<vmem>>, %arg7: memref<7x32xf32, #tpu.memory_space<vmem>>, %arg8: memref<32x32xf32, #tpu.memory_space<vmem>>) attributes {dimension_semantics = [], scalar_prefetch = 0 : i64, scratch_operands = 0 : i64, tpu.core_type = #tpu.core_type<tc>} {
    %c0 = arith.constant 0 : index
    %c0_0 = arith.constant 0 : index
    %0 = vector.load %arg0[%c0, %c0_0] : memref<32x32xf32, #tpu.memory_space<vmem>>, vector<32x32xf32>
    %c0_1 = arith.constant 0 : index
    %c0_2 = arith.constant 0 : index
    %1 = vector.load %arg6[%c0_1, %c0_2] : memref<2x128xf32, #tpu.memory_space<vmem>>, vector<2x128xf32>
    %c0_3 = arith.constant 0 : index
    %c0_4 = arith.constant 0 : index
    %2 = vector.load %arg7[%c0_3, %c0_4] : memref<7x32xf32, #tpu.memory_space<vmem>>, vector<7x32xf32>
    %3 = vector.extract_strided_slice %1 {offsets = [0, 0], sizes = [1, 96], strides = [1, 1]} : vector<2x128xf32> to vector<1x96xf32>
    %4 = vector.extract_strided_slice %1 {offsets = [1, 0], sizes = [1, 128], strides = [1, 1]} : vector<2x128xf32> to vector<1x128xf32>
    %5 = vector.extract_strided_slice %2 {offsets = [0, 0], sizes = [1, 32], strides = [1, 1]} : vector<7x32xf32> to vector<1x32xf32>
    %6 = vector.extract_strided_slice %2 {offsets = [1, 0], sizes = [1, 32], strides = [1, 1]} : vector<7x32xf32> to vector<1x32xf32>
    %7 = vector.extract_strided_slice %2 {offsets = [2, 0], sizes = [1, 32], strides = [1, 1]} : vector<7x32xf32> to vector<1x32xf32>
    %8 = vector.extract_strided_slice %2 {offsets = [3, 0], sizes = [1, 32], strides = [1, 1]} : vector<7x32xf32> to vector<1x32xf32>
    %9 = vector.extract_strided_slice %2 {offsets = [4, 0], sizes = [1, 32], strides = [1, 1]} : vector<7x32xf32> to vector<1x32xf32>
    %10 = vector.extract_strided_slice %2 {offsets = [5, 0], sizes = [1, 32], strides = [1, 1]} : vector<7x32xf32> to vector<1x32xf32>
    %11 = vector.extract_strided_slice %2 {offsets = [6, 0], sizes = [1, 32], strides = [1, 1]} : vector<7x32xf32> to vector<1x32xf32>
    %c0_5 = arith.constant 0 : index
    %c0_6 = arith.constant 0 : index
    %12 = vector.load %arg1[%c0_5, %c0_6] : memref<32x96xf32, #tpu.memory_space<vmem>>, vector<32x96xf32>
    %cst = arith.constant dense<0.000000e+00> : vector<32x96xf32>
    %13 = tpu.matmul %0, %12, %cst {dimension_numbers = #tpu.dot_dimension_numbers<[1], [0], [0], [1], [0, 0, 1, 1], [], []>} : vector<32x32xf32>, vector<32x96xf32>, vector<32x96xf32> -> vector<32x96xf32>
    %14 = vector.broadcast %3 : vector<1x96xf32> to vector<32x96xf32>
    %15 = arith.addf %13, %14 : vector<32x96xf32>
    %16 = vector.extract_strided_slice %15 {offsets = [0, 0], sizes = [32, 8], strides = [1, 1]} : vector<32x96xf32> to vector<32x8xf32>
    %17 = vector.extract_strided_slice %15 {offsets = [0, 8], sizes = [32, 8], strides = [1, 1]} : vector<32x96xf32> to vector<32x8xf32>
    %18 = vector.extract_strided_slice %15 {offsets = [0, 16], sizes = [32, 8], strides = [1, 1]} : vector<32x96xf32> to vector<32x8xf32>
    %19 = vector.extract_strided_slice %15 {offsets = [0, 24], sizes = [32, 8], strides = [1, 1]} : vector<32x96xf32> to vector<32x8xf32>
    %20 = vector.shape_cast %16 : vector<32x8xf32> to vector<1x32x8xf32>
    %21 = vector.shape_cast %17 : vector<32x8xf32> to vector<1x32x8xf32>
    %22 = vector.shape_cast %18 : vector<32x8xf32> to vector<1x32x8xf32>
    %23 = vector.shape_cast %19 : vector<32x8xf32> to vector<1x32x8xf32>
    %24 = tpu.concatenate %20, %21, %22, %23 in 0 : vector<1x32x8xf32>, vector<1x32x8xf32>, vector<1x32x8xf32>, vector<1x32x8xf32> -> vector<4x32x8xf32>
    %25 = vector.shape_cast %24 : vector<4x32x8xf32> to vector<8x16x8xf32>
    %26 = vector.extract_strided_slice %15 {offsets = [0, 32], sizes = [32, 8], strides = [1, 1]} : vector<32x96xf32> to vector<32x8xf32>
    %27 = vector.extract_strided_slice %15 {offsets = [0, 40], sizes = [32, 8], strides = [1, 1]} : vector<32x96xf32> to vector<32x8xf32>
    %28 = vector.extract_strided_slice %15 {offsets = [0, 48], sizes = [32, 8], strides = [1, 1]} : vector<32x96xf32> to vector<32x8xf32>
    %29 = vector.extract_strided_slice %15 {offsets = [0, 56], sizes = [32, 8], strides = [1, 1]} : vector<32x96xf32> to vector<32x8xf32>
    %30 = vector.shape_cast %26 : vector<32x8xf32> to vector<1x32x8xf32>
    %31 = vector.shape_cast %27 : vector<32x8xf32> to vector<1x32x8xf32>
    %32 = vector.shape_cast %28 : vector<32x8xf32> to vector<1x32x8xf32>
    %33 = vector.shape_cast %29 : vector<32x8xf32> to vector<1x32x8xf32>
    %34 = tpu.concatenate %30, %31, %32, %33 in 0 : vector<1x32x8xf32>, vector<1x32x8xf32>, vector<1x32x8xf32>, vector<1x32x8xf32> -> vector<4x32x8xf32>
    %35 = vector.shape_cast %34 : vector<4x32x8xf32> to vector<8x16x8xf32>
    %36 = vector.extract_strided_slice %15 {offsets = [0, 64], sizes = [32, 8], strides = [1, 1]} : vector<32x96xf32> to vector<32x8xf32>
    %37 = vector.extract_strided_slice %15 {offsets = [0, 72], sizes = [32, 8], strides = [1, 1]} : vector<32x96xf32> to vector<32x8xf32>
    %38 = vector.extract_strided_slice %15 {offsets = [0, 80], sizes = [32, 8], strides = [1, 1]} : vector<32x96xf32> to vector<32x8xf32>
    %39 = vector.extract_strided_slice %15 {offsets = [0, 88], sizes = [32, 8], strides = [1, 1]} : vector<32x96xf32> to vector<32x8xf32>
    %40 = vector.shape_cast %36 : vector<32x8xf32> to vector<1x32x8xf32>
    %41 = vector.shape_cast %37 : vector<32x8xf32> to vector<1x32x8xf32>
    %42 = vector.shape_cast %38 : vector<32x8xf32> to vector<1x32x8xf32>
    %43 = vector.shape_cast %39 : vector<32x8xf32> to vector<1x32x8xf32>
    %44 = tpu.concatenate %40, %41, %42, %43 in 0 : vector<1x32x8xf32>, vector<1x32x8xf32>, vector<1x32x8xf32>, vector<1x32x8xf32> -> vector<4x32x8xf32>
    %45 = vector.shape_cast %44 : vector<4x32x8xf32> to vector<8x16x8xf32>
    "tpu.trace_start"() <{level = 10 : i32, message = "bqd,bkd->bqk"}> : () -> ()
    %cst_7 = arith.constant dense<0.000000e+00> : vector<8x16x16xf32>
    %46 = tpu.matmul %25, %35, %cst_7 {dimension_numbers = #tpu.dot_dimension_numbers<[2], [2], [1], [1], [0, 0, 0, 1, 1, 1], [0], [0]>} : vector<8x16x8xf32>, vector<8x16x8xf32>, vector<8x16x16xf32> -> vector<8x16x16xf32>
    "tpu.trace_stop"() : () -> ()
    %cst_8 = arith.constant dense<0xFF800000> : vector<8x16xf32>
    %47 = vector.multi_reduction <maximumf>, %46, %cst_8 [2] : vector<8x16x16xf32> to vector<8x16xf32>
    %48 = vector.shape_cast %47 : vector<8x16xf32> to vector<8x16x1xf32>
    %49 = vector.broadcast %48 : vector<8x16x1xf32> to vector<8x16x16xf32>
    %50 = arith.subf %46, %49 : vector<8x16x16xf32>
    %51 = math.exp %50 : vector<8x16x16xf32>
    %cst_9 = arith.constant dense<0.000000e+00> : vector<8x16xf32>
    %52 = vector.multi_reduction <add>, %51, %cst_9 [2] : vector<8x16x16xf32> to vector<8x16xf32>
    %53 = vector.shape_cast %52 : vector<8x16xf32> to vector<8x16x1xf32>
    %54 = tpu.reciprocal %53 {approx = true} : vector<8x16x1xf32> -> vector<8x16x1xf32>
    %55 = vector.broadcast %54 : vector<8x16x1xf32> to vector<8x16x16xf32>
    %56 = arith.mulf %51, %55 : vector<8x16x16xf32>
    "tpu.trace_start"() <{level = 10 : i32, message = "bqk,bkd->bqd"}> : () -> ()
    %cst_10 = arith.constant dense<0.000000e+00> : vector<8x16x8xf32>
    %57 = tpu.matmul %56, %45, %cst_10 {dimension_numbers = #tpu.dot_dimension_numbers<[2], [1], [1], [2], [0, 0, 0, 1, 1, 2], [0], [0]>} : vector<8x16x16xf32>, vector<8x16x8xf32>, vector<8x16x8xf32> -> vector<8x16x8xf32>
    "tpu.trace_stop"() : () -> ()
    %58 = vector.shape_cast %57 : vector<8x16x8xf32> to vector<4x32x8xf32>
    %c0_11 = arith.constant 0 : index
    %c0_12 = arith.constant 0 : index
    %59 = vector.load %arg2[%c0_11, %c0_12] : memref<32x32xf32, #tpu.memory_space<vmem>>, vector<32x32xf32>
    %60 = vector.extract_strided_slice %58 {offsets = [0, 0, 0], sizes = [1, 32, 8], strides = [1, 1, 1]} : vector<4x32x8xf32> to vector<1x32x8xf32>
    %61 = vector.shape_cast %60 : vector<1x32x8xf32> to vector<32x8xf32>
    %62 = vector.extract_strided_slice %59 {offsets = [0, 0], sizes = [8, 32], strides = [1, 1]} : vector<32x32xf32> to vector<8x32xf32>
    %cst_13 = arith.constant dense<0.000000e+00> : vector<32x32xf32>
    %63 = tpu.matmul %61, %62, %cst_13 {dimension_numbers = #tpu.dot_dimension_numbers<[1], [0], [0], [1], [0, 0, 1, 1], [], []>} : vector<32x8xf32>, vector<8x32xf32>, vector<32x32xf32> -> vector<32x32xf32>
    %64 = vector.extract_strided_slice %58 {offsets = [1, 0, 0], sizes = [1, 32, 8], strides = [1, 1, 1]} : vector<4x32x8xf32> to vector<1x32x8xf32>
    %65 = vector.shape_cast %64 : vector<1x32x8xf32> to vector<32x8xf32>
    %66 = vector.extract_strided_slice %59 {offsets = [8, 0], sizes = [8, 32], strides = [1, 1]} : vector<32x32xf32> to vector<8x32xf32>
    %cst_14 = arith.constant dense<0.000000e+00> : vector<32x32xf32>
    %67 = tpu.matmul %65, %66, %cst_14 {dimension_numbers = #tpu.dot_dimension_numbers<[1], [0], [0], [1], [0, 0, 1, 1], [], []>} : vector<32x8xf32>, vector<8x32xf32>, vector<32x32xf32> -> vector<32x32xf32>
    %68 = arith.addf %63, %67 : vector<32x32xf32>
    %69 = vector.extract_strided_slice %58 {offsets = [2, 0, 0], sizes = [1, 32, 8], strides = [1, 1, 1]} : vector<4x32x8xf32> to vector<1x32x8xf32>
    %70 = vector.shape_cast %69 : vector<1x32x8xf32> to vector<32x8xf32>
    %71 = vector.extract_strided_slice %59 {offsets = [16, 0], sizes = [8, 32], strides = [1, 1]} : vector<32x32xf32> to vector<8x32xf32>
    %cst_15 = arith.constant dense<0.000000e+00> : vector<32x32xf32>
    %72 = tpu.matmul %70, %71, %cst_15 {dimension_numbers = #tpu.dot_dimension_numbers<[1], [0], [0], [1], [0, 0, 1, 1], [], []>} : vector<32x8xf32>, vector<8x32xf32>, vector<32x32xf32> -> vector<32x32xf32>
    %73 = arith.addf %68, %72 : vector<32x32xf32>
    %74 = vector.extract_strided_slice %58 {offsets = [3, 0, 0], sizes = [1, 32, 8], strides = [1, 1, 1]} : vector<4x32x8xf32> to vector<1x32x8xf32>
    %75 = vector.shape_cast %74 : vector<1x32x8xf32> to vector<32x8xf32>
    %76 = vector.extract_strided_slice %59 {offsets = [24, 0], sizes = [8, 32], strides = [1, 1]} : vector<32x32xf32> to vector<8x32xf32>
    %cst_16 = arith.constant dense<0.000000e+00> : vector<32x32xf32>
    %77 = tpu.matmul %75, %76, %cst_16 {dimension_numbers = #tpu.dot_dimension_numbers<[1], [0], [0], [1], [0, 0, 1, 1], [], []>} : vector<32x8xf32>, vector<8x32xf32>, vector<32x32xf32> -> vector<32x32xf32>
    %78 = arith.addf %73, %77 : vector<32x32xf32>
    %79 = vector.broadcast %5 : vector<1x32xf32> to vector<32x32xf32>
    %80 = arith.addf %78, %79 : vector<32x32xf32>
    %81 = arith.addf %0, %80 : vector<32x32xf32>
    %cst_17 = arith.constant dense<0.000000e+00> : vector<32xf32>
    %82 = vector.multi_reduction <add>, %81, %cst_17 [1] : vector<32x32xf32> to vector<32xf32>
    %83 = vector.shape_cast %82 : vector<32xf32> to vector<32x1xf32>
    %cst_18 = arith.constant 3.200000e+01 : f32
    %84 = vector.broadcast %cst_18 : f32 to vector<32x1xf32>
    %85 = arith.divf %83, %84 : vector<32x1xf32>
    %86 = vector.broadcast %85 : vector<32x1xf32> to vector<32x32xf32>
    %87 = arith.subf %81, %86 : vector<32x32xf32>
    %88 = arith.mulf %87, %87 : vector<32x32xf32>
    %cst_19 = arith.constant dense<0.000000e+00> : vector<32xf32>
    %89 = vector.multi_reduction <add>, %88, %cst_19 [1] : vector<32x32xf32> to vector<32xf32>
    %90 = vector.shape_cast %89 : vector<32xf32> to vector<32x1xf32>
    %cst_20 = arith.constant 3.200000e+01 : f32
    %91 = vector.broadcast %cst_20 : f32 to vector<32x1xf32>
    %92 = arith.divf %90, %91 : vector<32x1xf32>
    %93 = vector.broadcast %85 : vector<32x1xf32> to vector<32x32xf32>
    %94 = arith.subf %81, %93 : vector<32x32xf32>
    %cst_21 = arith.constant 9.99999974E-6 : f32
    %95 = vector.broadcast %cst_21 : f32 to vector<32x1xf32>
    %96 = arith.addf %92, %95 : vector<32x1xf32>
    %97 = math.rsqrt %96 : vector<32x1xf32>
    %98 = vector.broadcast %97 : vector<32x1xf32> to vector<32x32xf32>
    %99 = arith.mulf %94, %98 : vector<32x32xf32>
    %100 = vector.broadcast %6 : vector<1x32xf32> to vector<32x32xf32>
    %101 = arith.mulf %99, %100 : vector<32x32xf32>
    %102 = vector.broadcast %7 : vector<1x32xf32> to vector<32x32xf32>
    %103 = arith.addf %101, %102 : vector<32x32xf32>
    %c0_22 = arith.constant 0 : index
    %c0_23 = arith.constant 0 : index
    %104 = vector.load %arg3[%c0_22, %c0_23] : memref<32x128xf32, #tpu.memory_space<vmem>>, vector<32x128xf32>
    %cst_24 = arith.constant dense<0.000000e+00> : vector<32x128xf32>
    %105 = tpu.matmul %103, %104, %cst_24 {dimension_numbers = #tpu.dot_dimension_numbers<[1], [0], [0], [1], [0, 0, 1, 1], [], []>} : vector<32x32xf32>, vector<32x128xf32>, vector<32x128xf32> -> vector<32x128xf32>
    %106 = vector.broadcast %4 : vector<1x128xf32> to vector<32x128xf32>
    %107 = arith.addf %105, %106 : vector<32x128xf32>
    %108 = arith.mulf %107, %107 : vector<32x128xf32>
    %109 = arith.mulf %107, %108 : vector<32x128xf32>
    %cst_25 = arith.constant 4.471500e-02 : f32
    %110 = vector.broadcast %cst_25 : f32 to vector<32x128xf32>
    %111 = arith.mulf %110, %109 : vector<32x128xf32>
    %112 = arith.addf %107, %111 : vector<32x128xf32>
    %cst_26 = arith.constant 0.797884583 : f32
    %113 = vector.broadcast %cst_26 : f32 to vector<32x128xf32>
    %114 = arith.mulf %113, %112 : vector<32x128xf32>
    %115 = math.tanh %114 : vector<32x128xf32>
    %cst_27 = arith.constant 1.000000e+00 : f32
    %116 = vector.broadcast %cst_27 : f32 to vector<32x128xf32>
    %117 = arith.addf %116, %115 : vector<32x128xf32>
    %cst_28 = arith.constant 5.000000e-01 : f32
    %118 = vector.broadcast %cst_28 : f32 to vector<32x128xf32>
    %119 = arith.mulf %118, %117 : vector<32x128xf32>
    %120 = arith.mulf %107, %119 : vector<32x128xf32>
    %c0_29 = arith.constant 0 : index
    %c0_30 = arith.constant 0 : index
    %121 = vector.load %arg4[%c0_29, %c0_30] : memref<128x32xf32, #tpu.memory_space<vmem>>, vector<128x32xf32>
    %cst_31 = arith.constant dense<0.000000e+00> : vector<32x32xf32>
    %122 = tpu.matmul %120, %121, %cst_31 {dimension_numbers = #tpu.dot_dimension_numbers<[1], [0], [0], [1], [0, 0, 1, 1], [], []>} : vector<32x128xf32>, vector<128x32xf32>, vector<32x32xf32> -> vector<32x32xf32>
    %123 = vector.broadcast %8 : vector<1x32xf32> to vector<32x32xf32>
    %124 = arith.addf %122, %123 : vector<32x32xf32>
    %125 = arith.addf %103, %124 : vector<32x32xf32>
    %cst_32 = arith.constant dense<0.000000e+00> : vector<32xf32>
    %126 = vector.multi_reduction <add>, %125, %cst_32 [1] : vector<32x32xf32> to vector<32xf32>
    %127 = vector.shape_cast %126 : vector<32xf32> to vector<32x1xf32>
    %cst_33 = arith.constant 3.200000e+01 : f32
    %128 = vector.broadcast %cst_33 : f32 to vector<32x1xf32>
    %129 = arith.divf %127, %128 : vector<32x1xf32>
    %130 = vector.broadcast %129 : vector<32x1xf32> to vector<32x32xf32>
    %131 = arith.subf %125, %130 : vector<32x32xf32>
    %132 = arith.mulf %131, %131 : vector<32x32xf32>
    %cst_34 = arith.constant dense<0.000000e+00> : vector<32xf32>
    %133 = vector.multi_reduction <add>, %132, %cst_34 [1] : vector<32x32xf32> to vector<32xf32>
    %134 = vector.shape_cast %133 : vector<32xf32> to vector<32x1xf32>
    %cst_35 = arith.constant 3.200000e+01 : f32
    %135 = vector.broadcast %cst_35 : f32 to vector<32x1xf32>
    %136 = arith.divf %134, %135 : vector<32x1xf32>
    %137 = vector.broadcast %129 : vector<32x1xf32> to vector<32x32xf32>
    %138 = arith.subf %125, %137 : vector<32x32xf32>
    %cst_36 = arith.constant 9.99999974E-6 : f32
    %139 = vector.broadcast %cst_36 : f32 to vector<32x1xf32>
    %140 = arith.addf %136, %139 : vector<32x1xf32>
    %141 = math.rsqrt %140 : vector<32x1xf32>
    %142 = vector.broadcast %141 : vector<32x1xf32> to vector<32x32xf32>
    %143 = arith.mulf %138, %142 : vector<32x32xf32>
    %144 = vector.broadcast %9 : vector<1x32xf32> to vector<32x32xf32>
    %145 = arith.mulf %143, %144 : vector<32x32xf32>
    %146 = vector.broadcast %10 : vector<1x32xf32> to vector<32x32xf32>
    %147 = arith.addf %145, %146 : vector<32x32xf32>
    %c0_37 = arith.constant 0 : index
    %c0_38 = arith.constant 0 : index
    %148 = vector.load %arg5[%c0_37, %c0_38] : memref<32x32xf32, #tpu.memory_space<vmem>>, vector<32x32xf32>
    %cst_39 = arith.constant dense<0.000000e+00> : vector<32x32xf32>
    %149 = tpu.matmul %147, %148, %cst_39 {dimension_numbers = #tpu.dot_dimension_numbers<[1], [0], [0], [1], [0, 0, 1, 1], [], []>} : vector<32x32xf32>, vector<32x32xf32>, vector<32x32xf32> -> vector<32x32xf32>
    %150 = vector.broadcast %11 : vector<1x32xf32> to vector<32x32xf32>
    %151 = arith.addf %149, %150 : vector<32x32xf32>
    %c0_40 = arith.constant 0 : index
    %c0_41 = arith.constant 0 : index
    %152 = vector.load %arg8[%c0_40, %c0_41] : memref<32x32xf32, #tpu.memory_space<vmem>>, vector<32x32xf32>
    tpu.vector_store %arg8[%c0_40, %c0_41], %151 {strides = array<i32>} : memref<32x32xf32, #tpu.memory_space<vmem>>, vector<32x32xf32>,
    return
  }
}

</mosaic_0001>

<bundles_post_ra>
// kernel: tpu_custom_call.1
= control target key start
LH: loop header
LB: loop body
LE: loop exit
PB: predicated region body
PF: predicated region fallthrough
CT: control target
= control target key end

     0   :  { %vm44_vm0 = vcmask 261120   ;;  %s3831_s0 = inlined_call_operand.vmem [shape: f32[32,32], index: 0, kind: input, shape index: {}]   ;;  %s3832_s1 = inlined_call_operand.vmem [shape: f32[32,96], index: 1, kind: input, shape index: {}]   ;;  %s3833_s2 = inlined_call_operand.vmem [shape: f32[32,32], index: 2, kind: input, shape index: {}]   ;;  %s3834_s3 = inlined_call_operand.vmem [shape: f32[32,128], index: 3, kind: input, shape index: {}]   ;;  %s3835_s4 = inlined_call_operand.vmem [shape: f32[128,32], index: 4, kind: input, shape index: {}]   ;;  %s3836_s5 = inlined_call_operand.vmem [shape: f32[32,32], index: 5, kind: input, shape index: {}]   ;;  %s3837_s6 = inlined_call_operand.vmem [shape: f32[2,128], index: 6, kind: input, shape index: {}]   ;;  %s3838_s7 = inlined_call_operand.vmem [shape: f32[7,32], index: 7, kind: input, shape index: {}]   ;;  %s3839_s8 = inlined_call_operand.hbm [shape: f32[32,32], index: 8, kind: output, shape index: {}]  }
   0x1   :  { %v39_v0 = vld [vmem:[%s3832_s1 + $0x18] sm:$0xff]  ;;  %v38_v1 = vld [vmem:[%s3832_s1 + $0x10] sm:$0xff]  ;;  %v30_v2 = vld [vmem:[%s3831_s0] sm:$0xff] }
   0x2   :  { %2868 = vmatprep.subr.mxu0 %v39_v0  ;;  %v37_v3 = vld [vmem:[%s3832_s1 + $0x8] sm:$0xff]  ;;  %2876 = vmatprep.mubr.msk.f32.mxu0 %vm44_vm0, %v30_v2 }
   0x3   :  { %2869 = vmatpush3.msra.mxu0 %v39_v0 }
   0x4   :  { %2870 = vmatprep.subr.mxu0 %v38_v1 }
   0x5   :  { %13 = vsyncpa [#allocation3], 0  ;;  %2871 = vmatpush3.msra.mxu0 %v38_v1  ;;  %v36_v4 = vld [vmem:[%s3832_s1] sm:$0xff]  ;;  %v3286_v5 = vld [vmem:[%s3831_s0 + $0x8] sm:$0xff]  ;;  %v40_v8 = vlaneseq  ;;  %vm174_vm1 = vcmask 64512   ;;  %s3214_s22 = smov 120  }
   0x6   :  { %2872 = vmatprep.subr.mxu0 %v37_v3  ;;  %v32_v6 = vld [vmem:[%s3831_s0 + $0x10] sm:$0xff]  ;;  %v33_v7 = vld [vmem:[%s3831_s0 + $0x18] sm:$0xff]  ;;  %v34_v11 = vld [vmem:[%s3837_s6] sm:$0x3]  ;;  %s3215_s23 = smov 112   ;;  %s3216_s24 = smov 104  }
   0x7   :  { %2873 = vmatpush3.msra.mxu0 %v37_v3  ;;  %v3298_v9 = vshrl.u32 %v40_v8, 7  ;;  %s3217_s25 = smov 96   ;;  %s3218_s26 = smov 64   ;;  %vm867_vm2 = vcmask 130048  }
   0x8   :  { %2874 = vmatprep.subr.mxu0 %v36_v4 }
   0x9   :  { %2875 = vmatpush3.msra.mxu0 %v36_v4  ;;  %v42_v10 = vsub.s32 0, %v3298_v9 }
   0xa   :  { %2877 = vmatmul.mubr.msk.f32.vlgmr.msra.gmra.mxu0 %vm44_vm0, %v3286_v5 }
   0xb   :  { %2879 = vmatprep.mubr.msk.f32.mxu0 %vm44_vm0, %v32_v6  ;;  %v43_v12 = vrot.slane %v34_v11, %v42_v10 }
   0xe   :  { %2880 = vmatmul.mubr.msk.f32.gmra.mxu0 %vm44_vm0, %v33_v7 }
  0xca   :  { %v2878_v13 = vpop.f32.mrf.mxu0 }
  0xcb   :  { %v3306_v14 = vadd.f32 %v2878_v13, %v43_v12 }
  0xcc   :  { %v123_v15 = vpop.f32.mrf.mxu0 }
  0xcd   :  { %v124_v16 = vadd.f32 %v123_v15, %v43_v12  ;;  %148 = vrot.lane.b32.xlu0 %v3306_v14, %s3214_s22 }
  0xce   :  { %v2881_v17 = vpop.f32.mrf.mxu0 }
  0xcf   :  { %v3309_v18 = vadd.f32 %v2881_v17, %v43_v12  ;;  %2886 = vmatprep.mubr.msk.f32.mxu0 %vm174_vm1, %v124_v16 }
  0xd0   :  { %v133_v19 = vpop.f32.mrf.mxu0 }
  0xd1   :  { %152 = vrot.lane.b32.xlu1 %v3309_v18, %s3214_s22  ;;  %146 = vrot.lane.b32.xlu0 %v124_v16, %s3214_s22  ;;  %v134_v20 = vadd.f32 %v133_v19, %v43_v12 }
  0xd5   :  { %150 = vrot.lane.b32.xlu1 %v134_v20, %s3214_s22  ;;  %156 = vrot.lane.b32.xlu0 %v3306_v14, %s3215_s23 }
  0xd9   :  { %154 = vrot.lane.b32.xlu1 %v124_v16, %s3215_s23  ;;  %160 = vrot.lane.b32.xlu0 %v3309_v18, %s3215_s23 }
  0xdd   :  { %158 = vrot.lane.b32.xlu1 %v134_v20, %s3215_s23  ;;  %164 = vrot.lane.b32.xlu0 %v3306_v14, %s3216_s24 }
  0xe1   :  { %162 = vrot.lane.b32.xlu1 %v124_v16, %s3216_s24  ;;  %168 = vrot.lane.b32.xlu0 %v3309_v18, %s3216_s24 }
  0xe5   :  { %166 = vrot.lane.b32.xlu1 %v134_v20, %s3216_s24  ;;  %172 = vrot.lane.b32.xlu0 %v3306_v14, %s3217_s25 }
  0xe9   :  { %170 = vrot.lane.b32.xlu1 %v124_v16, %s3217_s25  ;;  %260 = vrot.lane.b32.xlu0 %v3309_v18, %s3217_s25 }
  0xed   :  { %258 = vrot.lane.b32.xlu1 %v134_v20, %s3217_s25 }
 0x13f   :  { %v3323_v21 = vpop.permute.xlu0 %148 }
 0x140   :  { %347 = vrot.lane.b32.xlu0 %v3323_v21, %s3217_s25 }
 0x143   :  { %v3327_v22 = vpop.permute.xlu1 %152  ;;  %v147_v23 = vpop.permute.xlu0 %146 }
 0x144   :  { %434 = vrot.lane.b32.xlu0 %v3327_v22, %s3217_s25  ;;  %2900 = vmatprep.mubr.msk.f32.mxu1 %vm174_vm1, %v147_v23 }
 0x145   :  { %345 = vrot.lane.b32.xlu1 %v147_v23, %s3217_s25 }
 0x147   :  { %v151_v24 = vpop.permute.xlu1 %150  ;;  %v3333_v25 = vpop.permute.xlu0 %156 }
 0x148   :  { %521 = vrot.lane.b32.xlu0 %v3333_v25, %s3217_s25 }
 0x149   :  { %432 = vrot.lane.b32.xlu1 %v151_v24, %s3217_s25 }
 0x14b   :  { %v155_v26 = vpop.permute.xlu1 %154  ;;  %v3338_v27 = vpop.permute.xlu0 %160 }
 0x14c   :  { %608 = vrot.lane.b32.xlu0 %v3338_v27, %s3217_s25 }
 0x14d   :  { %519 = vrot.lane.b32.xlu1 %v155_v26, %s3217_s25 }
 0x14f   :  { %v3343_v28 = vpop.permute.xlu1 %158  ;;  %v3345_v29 = vpop.permute.xlu0 %164 }
 0x150   :  { %695 = vrot.lane.b32.xlu0 %v3345_v29, %s3217_s25 }
 0x151   :  { %606 = vrot.lane.b32.xlu1 %v3343_v28, %s3217_s25 }
 0x153   :  { %v3351_v30 = vpop.permute.xlu1 %162  ;;  %v3353_v31 = vpop.permute.xlu0 %168 }
 0x154   :  { %782 = vrot.lane.b32.xlu0 %v3353_v31, %s3217_s25 }
 0x155   :  { %693 = vrot.lane.b32.xlu1 %v3351_v30, %s3217_s25 }
 0x157   :  { %v3359_v32 = vpop.permute.xlu1 %166  ;;  %v173_v33 = vpop.permute.xlu0 %172 }
 0x158   :  { %1044 = vrot.lane.b32.xlu0 %v124_v16, %s3218_s26  ;;  %2882 = vmatprep.subr.msk.mxu0 %vm174_vm1, %v173_v33 }
 0x159   :  { %780 = vrot.lane.b32.xlu1 %v3359_v32, %s3217_s25  ;;  %2883 = vmatpush3.xpose.msk.msra.mxu0 %vm174_vm1, %v173_v33 }
 0x15b   :  { %v171_v34 = vpop.permute.xlu1 %170  ;;  %v261_v35 = vpop.permute.xlu0 %260 }
 0x15c   :  { %1131 = vrot.lane.b32.xlu0 %v134_v20, %s3218_s26  ;;  %2884 = vmatprep.subr.msk.mxu0 %vm174_vm1, %v171_v34 }
 0x15d   :  { %1046 = vrot.lane.b32.xlu1 %v3306_v14, %s3218_s26  ;;  %2885 = vmatpush3.xpose.msk.msra.mxu0 %vm174_vm1, %v171_v34 }
 0x15e   :  { %2889 = vmatprep.subr.msk.mxu0 %vm174_vm1, %v261_v35 }
 0x15f   :  { %v259_v36 = vpop.permute.xlu1 %258 }
 0x160   :  { %1307 = vrot.lane.b32.xlu0 %v3327_v22, %s3218_s26  ;;  %2887 = vmatmul.mubr.msk.f32.vlgmr.msra.gmra.mxu0 %vm174_vm1, %v3306_v14 }
 0x161   :  { %1133 = vrot.lane.b32.xlu1 %v3309_v18, %s3218_s26  ;;  %2890 = vmatpush3.xpose.msk.msra.mxu0 %vm174_vm1, %v261_v35 }
 0x162   :  { %2893 = vmatprep.mubr.msk.f32.mxu0 %vm174_vm1, %v134_v20  ;;  %2891 = vmatprep.subr.msk.mxu0 %vm174_vm1, %v259_v36 }
 0x164   :  { %1394 = vrot.lane.b32.xlu0 %v3333_v25, %s3218_s26 }
 0x165   :  { %1220 = vrot.lane.b32.xlu1 %v3323_v21, %s3218_s26  ;;  %2892 = vmatpush3.xpose.msk.msra.mxu0 %vm174_vm1, %v259_v36 }
 0x168   :  { %2894 = vmatmul.mubr.msk.f32.vlgmr.msra.gmra.mxu0 %vm174_vm1, %v3309_v18 }
 0x169   :  { %1218 = vrot.lane.b32.xlu1 %v147_v23, %s3218_s26  ;;  %2907 = vmatprep.mubr.msk.f32.mxu0 %vm174_vm1, %v151_v24 }
 0x16d   :  { %1392 = vrot.lane.b32.xlu1 %v155_v26, %s3218_s26 }
 0x171   :  { %1305 = vrot.lane.b32.xlu1 %v151_v24, %s3218_s26 }
 0x1b2   :  { %v348_v37 = vpop.permute.xlu0 %347 }
 0x1b3   :  { %2896 = vmatprep.subr.msk.mxu1 %vm174_vm1, %v348_v37 }
 0x1b4   :  { %2897 = vmatpush3.xpose.msk.msra.mxu1 %vm174_vm1, %v348_v37 }
 0x1b6   :  { %v435_v38 = vpop.permute.xlu0 %434 }
 0x1b7   :  { %v346_v39 = vpop.permute.xlu1 %345  ;;  %2903 = vmatprep.subr.msk.mxu0 %vm174_vm1, %v435_v38 }
 0x1b8   :  { %2898 = vmatprep.subr.msk.mxu1 %vm174_vm1, %v346_v39  ;;  %2904 = vmatpush3.xpose.msk.msra.mxu0 %vm174_vm1, %v435_v38 }
 0x1b9   :  { %2899 = vmatpush3.xpose.msk.msra.mxu1 %vm174_vm1, %v346_v39 }
 0x1ba   :  { %v522_v40 = vpop.permute.xlu0 %521 }
 0x1bb   :  { %v433_v41 = vpop.permute.xlu1 %432  ;;  %2910 = vmatprep.subr.msk.mxu1 %vm174_vm1, %v522_v40 }
 0x1bc   :  { %2901 = vmatmul.mubr.msk.f32.vlgmr.msra.gmra.mxu1 %vm174_vm1, %v3323_v21  ;;  %2905 = vmatprep.subr.msk.mxu0 %vm174_vm1, %v433_v41 }
 0x1bd   :  { %2906 = vmatpush3.xpose.msk.msra.mxu0 %vm174_vm1, %v433_v41  ;;  %2911 = vmatpush3.xpose.msk.msra.mxu1 %vm174_vm1, %v522_v40 }
 0x1be   :  { %2914 = vmatprep.mubr.msk.f32.mxu1 %vm174_vm1, %v155_v26  ;;  %v609_v42 = vpop.permute.xlu0 %608 }
 0x1bf   :  { %v520_v43 = vpop.permute.xlu1 %519  ;;  %2917 = vmatprep.subr.msk.mxu0 %vm174_vm1, %v609_v42 }
 0x1c0   :  { %2908 = vmatmul.mubr.msk.f32.vlgmr.msra.gmra.mxu0 %vm174_vm1, %v3327_v22  ;;  %2912 = vmatprep.subr.msk.mxu1 %vm174_vm1, %v520_v43 }
 0x1c1   :  { %2913 = vmatpush3.xpose.msk.msra.mxu1 %vm174_vm1, %v520_v43  ;;  %2918 = vmatpush3.xpose.msk.msra.mxu0 %vm174_vm1, %v609_v42 }
 0x1c2   :  { %2921 = vmatprep.mubr.msk.f32.mxu0 %vm174_vm1, %v3343_v28  ;;  %v696_v44 = vpop.permute.xlu0 %695 }
 0x1c3   :  { %v607_v45 = vpop.permute.xlu1 %606  ;;  %2924 = vmatprep.subr.msk.mxu1 %vm174_vm1, %v696_v44 }
 0x1c4   :  { %2915 = vmatmul.mubr.msk.f32.vlgmr.msra.gmra.mxu1 %vm174_vm1, %v3333_v25  ;;  %2919 = vmatprep.subr.msk.mxu0 %vm174_vm1, %v607_v45 }
 0x1c5   :  { %2920 = vmatpush3.xpose.msk.msra.mxu0 %vm174_vm1, %v607_v45  ;;  %2925 = vmatpush3.xpose.msk.msra.mxu1 %vm174_vm1, %v696_v44 }
 0x1c6   :  { %2928 = vmatprep.mubr.msk.f32.mxu1 %vm174_vm1, %v3351_v30  ;;  %v783_v46 = vpop.permute.xlu0 %782 }
 0x1c7   :  { %v694_v47 = vpop.permute.xlu1 %693  ;;  %2931 = vmatprep.subr.msk.mxu0 %vm174_vm1, %v783_v46 }
 0x1c8   :  { %2922 = vmatmul.mubr.msk.f32.vlgmr.msra.gmra.mxu0 %vm174_vm1, %v3338_v27  ;;  %2926 = vmatprep.subr.msk.mxu1 %vm174_vm1, %v694_v47 }
 0x1c9   :  { %2927 = vmatpush3.xpose.msk.msra.mxu1 %vm174_vm1, %v694_v47  ;;  %2932 = vmatpush3.xpose.msk.msra.mxu0 %vm174_vm1, %v783_v46 }
 0x1ca   :  { %2935 = vmatprep.mubr.msk.f32.mxu0 %vm174_vm1, %v3359_v32  ;;  %v1045_v49 = vpop.permute.xlu0 %1044 }
 0x1cb   :  { %v781_v48 = vpop.permute.xlu1 %780 }
 0x1cc   :  { %2929 = vmatmul.mubr.msk.f32.vlgmr.msra.gmra.mxu1 %vm174_vm1, %v3345_v29  ;;  %2933 = vmatprep.subr.msk.mxu0 %vm174_vm1, %v781_v48 }
 0x1cd   :  { %2934 = vmatpush3.xpose.msk.msra.mxu0 %vm174_vm1, %v781_v48 }
 0x1ce   :  { %v3435_v51 = vpop.permute.xlu0 %1131 }
 0x1cf   :  { %v1047_v50 = vpop.permute.xlu1 %1046 }
 0x1d0   :  { %2936 = vmatmul.mubr.msk.f32.vlgmr.msra.gmra.mxu0 %vm174_vm1, %v3353_v31  ;;  %2938 = vmatprep.subr.mxu1 %v1047_v50 }
 0x1d1   :  { %2939 = vmatpush3.msra.mxu1 %v1047_v50 }
 0x1d2   :  { %2940 = vmatprep.subr.mxu1 %v1045_v49  ;;  %v3440_v53 = vpop.permute.xlu0 %1307 }
 0x1d3   :  { %v3437_v52 = vpop.permute.xlu1 %1133  ;;  %2941 = vmatpush3.msra.mxu1 %v1045_v49 }
 0x1d4   :  { %2945 = vmatprep.subr.mxu1 %v3437_v52 }
 0x1d6   :  { %v3442_v56 = vpop.permute.xlu0 %1394 }
 0x1d7   :  { %v1221_v54 = vpop.permute.xlu1 %1220 }
 0x1d8   :  { %2952 = vmatprep.subr.mxu0 %v1221_v54 }
 0x1d9   :  { %2953 = vmatpush3.msra.mxu0 %v1221_v54 }
 0x1db   :  { %v1219_v55 = vpop.permute.xlu1 %1218 }
 0x1dc   :  { %2954 = vmatprep.subr.mxu0 %v1219_v55 }
 0x1dd   :  { %2955 = vmatpush3.msra.mxu0 %v1219_v55 }
 0x1de   :  { %2966 = vmatprep.subr.mxu0 %v3442_v56 }
 0x1df   :  { %v3495_v26 = vpop.permute.xlu1 %1392 }
 0x1e3   :  { %v3499_v33 = vpop.permute.xlu1 %1305 }
 0x220   :  { %v2888_v57 = vpop.f32.mrf.mxu0 }
 0x221   :  { %v871_v58 = vsel %vm867_vm2, %v2888_v57, -inf }
 0x222   :  { %872 = vmax.xlane.f32.xlu1 %v871_v58  ;;  %v249_v59 = vpop.f32.mrf.mxu0 }
 0x223   :  { %v868_v60 = vsel %vm867_vm2, %v249_v59, -inf }
 0x224   :  { %869 = vmax.xlane.f32.xlu0 %v868_v60 }
 0x228   :  { %v2895_v61 = vpop.f32.mrf.mxu0 }
 0x229   :  { %v877_v62 = vsel %vm867_vm2, %v2895_v61, -inf }
 0x22a   :  { %878 = vmax.xlane.f32.xlu1 %v877_v62  ;;  %v336_v63 = vpop.f32.mrf.mxu0 }
 0x22b   :  { %v874_v0 = vsel %vm867_vm2, %v336_v63, -inf }
 0x22c   :  { %875 = vmax.xlane.f32.xlu0 %v874_v0 }
 0x27c   :  { %v3449_v1 = vpop.f32.mrf.mxu1 }
 0x27d   :  { %v883_v2 = vsel %vm867_vm2, %v3449_v1, -inf }
 0x27e   :  { %v3453_v3 = vpop.f32.mrf.mxu1  ;;  %884 = vmax.xlane.f32.xlu0 %v883_v2 }
 0x27f   :  { %v880_v6 = vsel %vm867_vm2, %v3453_v3, -inf }
 0x280   :  { %v3455_v4 = vpop.f32.mrf.mxu0 }
 0x281   :  { %v889_v12 = vsel %vm867_vm2, %v3455_v4, -inf }
 0x282   :  { %881 = vmax.xlane.f32.xlu0 %v880_v6  ;;  %v3459_v7 = vpop.f32.mrf.mxu0 }
 0x283   :  { %v886_v8 = vsel %vm867_vm2, %v3459_v7, -inf }
 0x284   :  { %v3463_v11 = vpop.f32.mrf.mxu1  ;;  %887 = vmax.xlane.f32.xlu1 %v886_v8 }
 0x285   :  { %v895_v16 = vsel %vm867_vm2, %v3463_v11, -inf }
 0x286   :  { %v3467_v13 = vpop.f32.mrf.mxu1  ;;  %890 = vmax.xlane.f32.xlu0 %v889_v12 }
 0x287   :  { %v892_v14 = vsel %vm867_vm2, %v3467_v13, -inf }
 0x288   :  { %893 = vmax.xlane.f32.xlu1 %v892_v14  ;;  %v3471_v15 = vpop.f32.mrf.mxu0 }
 0x289   :  { %v901_v17 = vsel %vm867_vm2, %v3471_v15, -inf }
 0x28a   :  { %896 = vmax.xlane.f32.xlu0 %v895_v16  ;;  %v3477_v18 = vpop.f32.mrf.mxu0 }
 0x28b   :  { %v898_v22 = vsel %vm867_vm2, %v3477_v18, -inf }
 0x28c   :  { %v3479_v19 = vpop.f32.mrf.mxu1  ;;  %902 = vmax.xlane.f32.xlu1 %v901_v17 }
 0x28d   :  { %v907_v20 = vsel %vm867_vm2, %v3479_v19, -inf }
 0x28e   :  { %v3483_v21 = vpop.f32.mrf.mxu1  ;;  %908 = vmax.xlane.f32.xlu0 %v907_v20 }
 0x28f   :  { %v904_v23 = vsel %vm867_vm2, %v3483_v21, -inf }
 0x290   :  { %899 = vmax.xlane.f32.xlu1 %v898_v22  ;;  %v3489_v24 = vpop.f32.mrf.mxu0 }
 0x291   :  { %v913_v25 = vsel %vm867_vm2, %v3489_v24, -inf }
 0x292   :  { %905 = vmax.xlane.f32.xlu0 %v904_v23  ;;  %v3503_v37 = vpop.f32.mrf.mxu0 }
 0x293   :  { %v910_v38 = vsel %vm867_vm2, %v3503_v37, -inf }
 0x296   :  { %914 = vmax.xlane.f32.xlu0 %v913_v25 }
 0x2a1   :  { %1568 = vrot.lane.b32.xlu1 %v3345_v29, %s3218_s26 }
 0x2ab   :  { %v873_v34 = vpop.xlane.xlu1 %872 }
 0x2ac   :  { %1481 = vrot.lane.b32.xlu0 %v3338_v27, %s3218_s26  ;;  %v917_v35 = vsub.f32 %v2888_v57, %v873_v34 }
 0x2ae   :  { %v934_v36 = vmul.f32 1.442695, %v917_v35 }
 0x2b0   :  { %1479 = vrot.lane.b32.xlu0 %v3343_v28, %s3218_s26  ;;  %3100 = vpow2.f32 %v934_v36  ;;  %v870_v28 = vpop.xlane.xlu0 %869 }
 0x2b1   :  { %v916_v39 = vsub.f32 %v249_v59, %v870_v28 }
 0x2b3   :  { %v879_v40 = vpop.xlane.xlu1 %878  ;;  %v932_v41 = vmul.f32 1.442695, %v916_v39 }
 0x2b4   :  { %v919_v42 = vsub.f32 %v2895_v61, %v879_v40 }
 0x2b5   :  { %v876_v43 = vpop.xlane.xlu0 %875  ;;  %3102 = vpow2.f32 %v932_v41 }
 0x2b6   :  { %v938_v44 = vmul.f32 1.442695, %v919_v42  ;;  %v918_v45 = vsub.f32 %v336_v63, %v876_v43 }
 0x2b8   :  { %3104 = vpow2.f32 %v938_v44  ;;  %v936_v46 = vmul.f32 1.442695, %v918_v45 }
 0x2ba   :  { %3106 = vpow2.f32 %v936_v46 }
 0x2bd   :  { %v3507_v29 = vpop.eup %3100 }
 0x2be   :  { %v967_v27 = vsel %vm867_vm2, %v3507_v29, 0.0 }
 0x2c2   :  { %v3513_v47 = vpop.eup %3102 }
 0x2c3   :  { %v964_v48 = vsel %vm867_vm2, %v3513_v47, 0.0 }
 0x2c5   :  { %911 = vmax.xlane.f32.xlu1 %v910_v38  ;;  %v3517_v49 = vpop.eup %3104 }
 0x2c7   :  { %v3521_v50 = vpop.eup %3106 }
 0x2c8   :  { %v970_v54 = vsel %vm867_vm2, %v3521_v50, 0.0 }
 0x2cf   :  { %968 = vadd.xlane.f32.xlu0 %v967_v27 }
 0x2d6   :  { %1566 = vrot.lane.b32.xlu1 %v3351_v30, %s3218_s26  ;;  %v973_v30 = vsel %vm867_vm2, %v3517_v49, 0.0 }
 0x2fa   :  { %965 = vadd.xlane.f32.xlu1 %v964_v48 }
 0x2fe   :  { %974 = vadd.xlane.f32.xlu1 %v973_v30 }
 0x302   :  { %971 = vadd.xlane.f32.xlu1 %v970_v54 }
 0x307   :  { %v885_v55 = vpop.xlane.xlu0 %884 }
 0x308   :  { %v921_v57 = vsub.f32 %v3449_v1, %v885_v55 }
 0x30a   :  { %v942_v58 = vmul.f32 1.442695, %v921_v57 }
 0x30b   :  { %v882_v59 = vpop.xlane.xlu0 %881 }
 0x30c   :  { %3108 = vpow2.f32 %v942_v58  ;;  %v920_v60 = vsub.f32 %v3453_v3, %v882_v59 }
 0x30d   :  { %v888_v61 = vpop.xlane.xlu1 %887 }
 0x30e   :  { %v940_v62 = vmul.f32 1.442695, %v920_v60  ;;  %v922_v63 = vsub.f32 %v3459_v7, %v888_v61 }
 0x30f   :  { %v891_v0 = vpop.xlane.xlu0 %890 }
 0x310   :  { %3110 = vpow2.f32 %v940_v62  ;;  %v944_v2 = vmul.f32 1.442695, %v922_v63  ;;  %v923_v6 = vsub.f32 %v3455_v4, %v891_v0 }
 0x311   :  { %v894_v8 = vpop.xlane.xlu1 %893 }
 0x312   :  { %3112 = vpow2.f32 %v944_v2  ;;  %v946_v12 = vmul.f32 1.442695, %v923_v6  ;;  %v924_v14 = vsub.f32 %v3467_v13, %v894_v8 }
 0x313   :  { %v897_v1 = vpop.xlane.xlu0 %896 }
 0x314   :  { %3114 = vpow2.f32 %v946_v12  ;;  %v948_v16 = vmul.f32 1.442695, %v924_v14  ;;  %v925_v17 = vsub.f32 %v3463_v11, %v897_v1 }
 0x315   :  { %v903_v3 = vpop.xlane.xlu1 %902 }
 0x316   :  { %3116 = vpow2.f32 %v948_v16  ;;  %v950_v20 = vmul.f32 1.442695, %v925_v17  ;;  %v927_v7 = vsub.f32 %v3471_v15, %v903_v3 }
 0x317   :  { %v909_v22 = vpop.xlane.xlu0 %908 }
 0x318   :  { %3118 = vpow2.f32 %v950_v20  ;;  %v954_v23 = vmul.f32 1.442695, %v927_v7  ;;  %v929_v4 = vsub.f32 %v3479_v19, %v909_v22 }
 0x319   :  { %v3533_v25 = vpop.eup %3108  ;;  %v900_v34 = vpop.xlane.xlu1 %899 }
 0x31a   :  { %3120 = vpow2.f32 %v954_v23  ;;  %v958_v13 = vmul.f32 1.442695, %v929_v4  ;;  %v926_v35 = vsub.f32 %v3477_v18, %v900_v34  ;;  %v979_v11 = vsel %vm867_vm2, %v3533_v25, 0.0 }
 0x31b   :  { %v906_v36 = vpop.xlane.xlu0 %905  ;;  %980 = vadd.xlane.f32.xlu0 %v979_v11 }
 0x31c   :  { %3122 = vpow2.f32 %v958_v13  ;;  %v952_v38 = vmul.f32 1.442695, %v926_v35  ;;  %v928_v15 = vsub.f32 %v3483_v21, %v906_v36 }
 0x31d   :  { %v3539_v27 = vpop.eup %3110  ;;  %v3582_v63 = vpop.permute.xlu1 %1568 }
 0x31e   :  { %3124 = vpow2.f32 %v952_v38  ;;  %v956_v19 = vmul.f32 1.442695, %v928_v15  ;;  %v976_v28 = vsel %vm867_vm2, %v3539_v27, 0.0 }
 0x31f   :  { %v3543_v39 = vpop.eup %3112  ;;  %977 = vadd.xlane.f32.xlu0 %v976_v28  ;;  %v915_v18 = vpop.xlane.xlu0 %914 }
 0x320   :  { %3126 = vpow2.f32 %v956_v19  ;;  %v931_v40 = vsub.f32 %v3489_v24, %v915_v18  ;;  %v982_v41 = vsel %vm867_vm2, %v3543_v39, 0.0 }
 0x321   :  { %v3548_v42 = vpop.eup %3114  ;;  %983 = vadd.xlane.f32.xlu1 %v982_v41 }
 0x322   :  { %v962_v21 = vmul.f32 1.442695, %v931_v40  ;;  %v985_v43 = vsel %vm867_vm2, %v3548_v42, 0.0 }
 0x323   :  { %v3552_v44 = vpop.eup %3116  ;;  %986 = vadd.xlane.f32.xlu0 %v985_v43  ;;  %v3591_v14 = vpop.permute.xlu0 %1481 }
 0x324   :  { %3128 = vpow2.f32 %v962_v21  ;;  %v988_v45 = vsel %vm867_vm2, %v3552_v44, 0.0 }
 0x325   :  { %v3556_v46 = vpop.eup %3118  ;;  %989 = vadd.xlane.f32.xlu1 %v988_v45 }
 0x326   :  { %v991_v24 = vsel %vm867_vm2, %v3556_v46, 0.0 }
 0x327   :  { %v3560_v48 = vpop.eup %3120  ;;  %992 = vadd.xlane.f32.xlu0 %v991_v24  ;;  %v3593_v1 = vpop.permute.xlu0 %1479 }
 0x328   :  { %v997_v30 = vsel %vm867_vm2, %v3560_v48, 0.0 }
 0x329   :  { %v3564_v54 = vpop.eup %3122  ;;  %998 = vadd.xlane.f32.xlu1 %v997_v30 }
 0x32a   :  { %v1003_v55 = vsel %vm867_vm2, %v3564_v54, 0.0 }
 0x32b   :  { %v3568_v57 = vpop.eup %3124  ;;  %1004 = vadd.xlane.f32.xlu0 %v1003_v55 }
 0x32c   :  { %v994_v58 = vsel %vm867_vm2, %v3568_v57, 0.0 }
 0x32d   :  { %v3572_v59 = vpop.eup %3126  ;;  %995 = vadd.xlane.f32.xlu1 %v994_v58 }
 0x32e   :  { %v1000_v60 = vsel %vm867_vm2, %v3572_v59, 0.0 }
 0x32f   :  { %1001 = vadd.xlane.f32.xlu0 %v1000_v60 }
 0x331   :  { %v3576_v61 = vpop.eup %3128 }
 0x332   :  { %v1009_v62 = vsel %vm867_vm2, %v3576_v61, 0.0 }
 0x333   :  { %1010 = vadd.xlane.f32.xlu0 %v1009_v62 }
 0x349   :  { %1655 = vrot.lane.b32.xlu0 %v3353_v31, %s3218_s26 }
 0x34e   :  { %v912_v0 = vpop.xlane.xlu1 %911 }
 0x34f   :  { %v930_v2 = vsub.f32 %v3503_v37, %v912_v0  ;;  %v1742_v0 = vld [vmem:[%s3833_s2 + $0x10] sm:$0xff] }
 0x351   :  { %v960_v6 = vmul.f32 1.442695, %v930_v2 }
 0x352   :  { %v3595_v31 = vpop.permute.xlu1 %1566 }
 0x353   :  { %3130 = vpow2.f32 %v960_v6 }
 0x358   :  { %v969_v16 = vpop.xlane.xlu0 %968 }
 0x359   :  { %3132 = vrcp.f32 %v969_v16 }
 0x360   :  { %v3585_v8 = vpop.eup %3130 }
 0x361   :  { %v1006_v12 = vsel %vm867_vm2, %v3585_v8, 0.0 }
 0x362   :  { %1007 = vadd.xlane.f32.xlu1 %v1006_v12 }
 0x366   :  { %v3133_v20 = vpop.eup %3132 }
 0x373   :  { %1653 = vrot.lane.b32.xlu1 %v3359_v32, %s3218_s26  ;;  %v1029_v32 = vmul.f32 %v3133_v20, %v3507_v29 }
 0x383   :  { %v966_v37 = vpop.xlane.xlu1 %965 }
 0x384   :  { %3134 = vrcp.f32 %v966_v37 }
 0x387   :  { %v975_v17 = vpop.xlane.xlu1 %974 }
 0x388   :  { %3136 = vrcp.f32 %v975_v17 }
 0x38b   :  { %v972_v3 = vpop.xlane.xlu1 %971 }
 0x38c   :  { %3138 = vrcp.f32 %v972_v3 }
 0x391   :  { %v3135_v7 = vpop.eup %3134 }
 0x392   :  { %v1028_v22 = vmul.f32 %v3135_v7, %v3513_v47 }
 0x394   :  { %2942 = vmatprep.mubr.msk.f32.mxu1 %vm867_vm2, %v1028_v22 }
 0x395   :  { %2943 = vmatmul.mubr.msk.f32.vlgmr.msra.gmra.mxu1 %vm867_vm2, %v1029_v32  ;;  %v3137_v23 = vpop.eup %3136 }
 0x396   :  { %2946 = vmatpush3.msra.mxu1 %v3437_v52  ;;  %v1031_v47 = vmul.f32 %v3137_v23, %v3517_v49 }
 0x397   :  { %2947 = vmatprep.subr.mxu1 %v3435_v51 }
 0x398   :  { %2948 = vmatpush3.msra.mxu1 %v3435_v51 }
 0x399   :  { %v3139_v4 = vpop.eup %3138  ;;  %2959 = vmatprep.subr.mxu1 %v3440_v53 }
 0x39a   :  { %v1030_v34 = vmul.f32 %v3139_v4, %v3521_v50 }
 0x39c   :  { %2949 = vmatprep.mubr.msk.f32.mxu1 %vm867_vm2, %v1030_v34 }
 0x39d   :  { %2950 = vmatmul.mubr.msk.f32.vlgmr.msra.gmra.mxu1 %vm867_vm2, %v1031_v47 }
 0x39e   :  { %2960 = vmatpush3.msra.mxu1 %v3440_v53 }
 0x39f   :  { %2961 = vmatprep.subr.mxu1 %v3499_v33 }
 0x3a0   :  { %2962 = vmatpush3.msra.mxu1 %v3499_v33 }
 0x3a1   :  { %2973 = vmatprep.subr.mxu1 %v3591_v14 }
 0x3a4   :  { %v981_v51 = vpop.xlane.xlu0 %980 }
 0x3a5   :  { %3140 = vrcp.f32 %v981_v51 }
 0x3a8   :  { %v978_v52 = vpop.xlane.xlu0 %977 }
 0x3a9   :  { %3142 = vrcp.f32 %v978_v52 }
 0x3aa   :  { %v984_v29 = vpop.xlane.xlu1 %983 }
 0x3ab   :  { %3144 = vrcp.f32 %v984_v29 }
 0x3ac   :  { %v987_v50 = vpop.xlane.xlu0 %986 }
 0x3ad   :  { %3146 = vrcp.f32 %v987_v50 }
 0x3ae   :  { %v990_v49 = vpop.xlane.xlu1 %989 }
 0x3af   :  { %3148 = vrcp.f32 %v990_v49 }
 0x3b0   :  { %v993_v13 = vpop.xlane.xlu0 %992 }
 0x3b1   :  { %3150 = vrcp.f32 %v993_v13  ;;  %v3678_v13 = vld [vmem:[%s3838_s7] sm:$0x7f] }
 0x3b2   :  { %v999_v35 = vpop.xlane.xlu1 %998  ;;  %v3141_v11 = vpop.eup %3140 }
 0x3b3   :  { %3152 = vrcp.f32 %v999_v35  ;;  %v1033_v28 = vmul.f32 %v3141_v11, %v3533_v25 }
 0x3b4   :  { %v1005_v53 = vpop.xlane.xlu0 %1004 }
 0x3b6   :  { %v3143_v36 = vpop.eup %3142  ;;  %v996_v33 = vpop.xlane.xlu1 %995 }
 0x3b7   :  { %3154 = vrcp.f32 %v996_v33  ;;  %v1032_v38 = vmul.f32 %v3143_v36, %v3539_v27 }
 0x3b8   :  { %v3145_v15 = vpop.eup %3144  ;;  %3156 = vrcp.f32 %v1005_v53  ;;  %v1002_v19 = vpop.xlane.xlu0 %1001 }
 0x3b9   :  { %3158 = vrcp.f32 %v1002_v19  ;;  %2956 = vmatprep.mubr.msk.f32.mxu0 %vm867_vm2, %v1032_v38  ;;  %v1034_v18 = vmul.f32 %v3145_v15, %v3543_v39  ;;  %v2143_v38 = vrot.slane %v3678_v13, %v42_v10 }
 0x3ba   :  { %v3147_v40 = vpop.eup %3146  ;;  %2957 = vmatmul.mubr.msk.f32.vlgmr.msra.gmra.mxu0 %vm867_vm2, %v1033_v28 }
 0x3bb   :  { %2967 = vmatpush3.msra.mxu0 %v3442_v56  ;;  %2963 = vmatprep.mubr.msk.f32.mxu1 %vm867_vm2, %v1034_v18  ;;  %v1035_v41 = vmul.f32 %v3147_v40, %v3548_v42 }
 0x3bc   :  { %v3149_v27 = vpop.eup %3148  ;;  %2968 = vmatprep.subr.mxu0 %v3495_v26  ;;  %v1011_v21 = vpop.xlane.xlu0 %1010 }
 0x3bd   :  { %2969 = vmatpush3.msra.mxu0 %v3495_v26  ;;  %2964 = vmatmul.mubr.msk.f32.vlgmr.msra.gmra.mxu1 %vm867_vm2, %v1035_v41  ;;  %v1036_v25 = vmul.f32 %v3149_v27, %v3552_v44  ;;  %3160 = vrcp.f32 %v1011_v21 }
 0x3be   :  { %v3151_v39 = vpop.eup %3150  ;;  %2974 = vmatpush3.msra.mxu1 %v3591_v14  ;;  %2980 = vmatprep.subr.mxu0 %v3582_v63 }
 0x3bf   :  { %2975 = vmatprep.subr.mxu1 %v3593_v1  ;;  %2970 = vmatprep.mubr.msk.f32.mxu0 %vm867_vm2, %v1036_v25  ;;  %v1037_v56 = vmul.f32 %v3151_v39, %v3556_v46  ;;  %v3188_v39 = vld [vmem:[%s3831_s0] sm:$0xff] }
 0x3c0   :  { %2976 = vmatpush3.msra.mxu1 %v3593_v1  ;;  %v1656_v42 = vpop.permute.xlu0 %1655  ;;  %v3153_v26 = vpop.eup %3152 }
 0x3c1   :  { %2971 = vmatmul.mubr.msk.f32.vlgmr.msra.gmra.mxu0 %vm867_vm2, %v1037_v56  ;;  %2987 = vmatprep.subr.mxu1 %v1656_v42  ;;  %v1039_v46 = vmul.f32 %v3153_v26, %v3560_v48  ;;  %v1740_v48 = vld [vmem:[%s3833_s2] sm:$0xff] }
 0x3c2   :  { %2981 = vmatpush3.msra.mxu0 %v3582_v63  ;;  %v1741_v63 = vld [vmem:[%s3833_s2 + $0x8] sm:$0xff] }
 0x3c3   :  { %2982 = vmatprep.subr.mxu0 %v3595_v31 }
 0x3c4   :  { %v3155_v43 = vpop.eup %3154  ;;  %2983 = vmatpush3.msra.mxu0 %v3595_v31 }
 0x3c5   :  { %v3157_v44 = vpop.eup %3156  ;;  %v1038_v45 = vmul.f32 %v3155_v43, %v3568_v57  ;;  %2994 = vmatprep.subr.mxu0 %v1741_v63 }
 0x3c6   :  { %v3159_v24 = vpop.eup %3158  ;;  %v1041_v55 = vmul.f32 %v3157_v44, %v3564_v54 }
 0x3c7   :  { %2977 = vmatprep.mubr.msk.f32.mxu1 %vm867_vm2, %v1038_v45  ;;  %v1040_v30 = vmul.f32 %v3159_v24, %v3572_v59 }
 0x3c8   :  { %2978 = vmatmul.mubr.msk.f32.vlgmr.msra.gmra.mxu1 %vm867_vm2, %v1039_v46 }
 0x3c9   :  { %2988 = vmatpush3.msra.mxu1 %v1656_v42  ;;  %2984 = vmatprep.mubr.msk.f32.mxu0 %vm867_vm2, %v1040_v30 }
 0x3ca   :  { %2985 = vmatmul.mubr.msk.f32.vlgmr.msra.gmra.mxu0 %vm867_vm2, %v1041_v55  ;;  %v3161_v59 = vpop.eup %3160 }
 0x3cb   :  { %v1043_v62 = vmul.f32 %v3161_v59, %v3576_v61  ;;  %2995 = vmatpush3.msra.mxu0 %v1741_v63  ;;  %v1743_v61 = vld [vmem:[%s3833_s2 + $0x18] sm:$0xff] }
 0x3cc   :  { %3010 = vmatprep.subr.mxu0 %v1742_v0 }
 0x3eb   :  { %v1008_v58 = vpop.xlane.xlu1 %1007 }
 0x3ec   :  { %3162 = vrcp.f32 %v1008_v58 }
 0x3ef   :  { %v1654_v57 = vpop.permute.xlu1 %1653 }
 0x3f0   :  { %2989 = vmatprep.subr.mxu1 %v1654_v57 }
 0x3f1   :  { %2990 = vmatpush3.msra.mxu1 %v1654_v57 }
 0x3f2   :  { %3002 = vmatprep.subr.mxu1 %v1740_v48 }
 0x3f9   :  { %v3163_v60 = vpop.eup %3162 }
 0x3fa   :  { %v1042_v54 = vmul.f32 %v3163_v60, %v3585_v8 }
 0x3fc   :  { %2991 = vmatprep.mubr.msk.f32.mxu1 %vm867_vm2, %v1042_v54  ;;  %v3190_v54 = vld [vmem:[%s3831_s0 + $0x18] sm:$0xff] }
 0x3fd   :  { %2992 = vmatmul.mubr.msk.f32.vlgmr.msra.gmra.mxu1 %vm867_vm2, %v1043_v62 }
 0x3fe   :  { %3003 = vmatpush3.msra.mxu1 %v1740_v48  ;;  %v3189_v48 = vld [vmem:[%s3831_s0 + $0x10] sm:$0xff] }
 0x3ff   :  { %3018 = vmatprep.subr.mxu1 %v1743_v61 }
 0x455   :  { %v2944_v2 = vpop.f32.mrf.mxu1 }
 0x457   :  { %v1122_v6 = vpop.f32.mrf.mxu1 }
 0x458   :  { %3004 = vmatprep.mubr.msk.f32.mxu1 %vm174_vm1, %v1122_v6 }
 0x459   :  { %3005 = vmatmul.mubr.msk.f32.vlgmr.msra.gmra.mxu1 %vm174_vm1, %v2944_v2 }
 0x45a   :  { %3019 = vmatpush3.msra.mxu1 %v1743_v61 }
 0x45d   :  { %v2951_v8 = vpop.f32.mrf.mxu1 }
 0x45f   :  { %v1209_v12 = vpop.f32.mrf.mxu1 }
 0x460   :  { %3007 = vmatprep.mubr.msk.f32.mxu1 %vm174_vm1, %v1209_v12 }
 0x461   :  { %3008 = vmatmul.mubr.msk.f32.gmra.mxu1 %vm174_vm1, %v2951_v8 }
 0x47a   :  { %v2958_v14 = vpop.f32.mrf.mxu0 }
 0x47c   :  { %v1296_v1 = vpop.f32.mrf.mxu0 }
 0x47d   :  { %v2965_v31 = vpop.f32.mrf.mxu1  ;;  %2996 = vmatprep.mubr.msk.f32.mxu0 %vm174_vm1, %v1296_v1 }
 0x47e   :  { %2997 = vmatmul.mubr.msk.f32.vlgmr.msra.gmra.mxu0 %vm174_vm1, %v2958_v14 }
 0x47f   :  { %v1383_v16 = vpop.f32.mrf.mxu1  ;;  %3011 = vmatpush3.msra.mxu0 %v1742_v0 }
 0x480   :  { %2999 = vmatprep.mubr.msk.f32.mxu0 %vm174_vm1, %v1383_v16 }
 0x481   :  { %v2972_v37 = vpop.f32.mrf.mxu0 }
 0x482   :  { %3000 = vmatmul.mubr.msk.f32.gmra.mxu0 %vm174_vm1, %v2965_v31 }
 0x483   :  { %v1470_v17 = vpop.f32.mrf.mxu0 }
 0x484   :  { %3012 = vmatprep.mubr.msk.f32.mxu0 %vm174_vm1, %v1470_v17  ;;  %v2223_v17 = vld [vmem:[%s3834_s3 + $0x10] sm:$0xff] }
 0x486   :  { %3013 = vmatmul.mubr.msk.f32.vlgmr.msra.gmra.mxu0 %vm174_vm1, %v2972_v37  ;;  %v2224_v37 = vld [vmem:[%s3834_s3 + $0x18] sm:$0xff] }
 0x487   :  { %3026 = vmatprep.subr.mxu0 %v2224_v37 }
 0x488   :  { %v2979_v3 = vpop.f32.mrf.mxu1  ;;  %3027 = vmatpush3.msra.mxu0 %v2224_v37  ;;  %v3191_v37 = vld [vmem:[%s3837_s6] sm:$0x3] }
 0x489   :  { %3028 = vmatprep.subr.mxu0 %v2223_v17 }
 0x48a   :  { %v1557_v20 = vpop.f32.mrf.mxu1  ;;  %v2986_v7 = vpop.f32.mrf.mxu0  ;;  %3029 = vmatpush3.msra.mxu0 %v2223_v17 }
 0x48b   :  { %3015 = vmatprep.mubr.msk.f32.mxu0 %vm174_vm1, %v1557_v20  ;;  %v2221_v20 = vld [vmem:[%s3834_s3] sm:$0xff] }
 0x48c   :  { %v1644_v22 = vpop.f32.mrf.mxu0  ;;  %3016 = vmatmul.mubr.msk.f32.gmra.mxu0 %vm174_vm1, %v2979_v3  ;;  %v2222_v3 = vld [vmem:[%s3834_s3 + $0x8] sm:$0xff] }
 0x48d   :  { %3020 = vmatprep.mubr.msk.f32.mxu1 %vm174_vm1, %v1644_v22  ;;  %3030 = vmatprep.subr.mxu0 %v2222_v3 }
 0x48e   :  { %3021 = vmatmul.mubr.msk.f32.vlgmr.msra.gmra.mxu1 %vm174_vm1, %v2986_v7  ;;  %3031 = vmatpush3.msra.mxu0 %v2222_v3 }
 0x48f   :  { %3032 = vmatprep.subr.mxu0 %v2221_v20 }
 0x490   :  { %3033 = vmatpush3.msra.mxu0 %v2221_v20 }
 0x4bd   :  { %v2993_v32 = vpop.f32.mrf.mxu1 }
 0x4bf   :  { %v1731_v23 = vpop.f32.mrf.mxu1 }
 0x4c0   :  { %3023 = vmatprep.mubr.msk.f32.mxu1 %vm174_vm1, %v1731_v23 }
 0x4c1   :  { %3024 = vmatmul.mubr.msk.f32.gmra.mxu1 %vm174_vm1, %v2993_v32 }
 0x519   :  { %v3006_v47 = vpop.f32.mrf.mxu1 }
 0x51b   :  { %v1919_v29 = vpop.f32.mrf.mxu1 }
 0x521   :  { %v3009_v50 = vpop.f32.mrf.mxu1 }
 0x523   :  { %v1929_v53 = vpop.f32.mrf.mxu1 }
 0x53e   :  { %v2998_v4 = vpop.f32.mrf.mxu0 }
 0x53f   :  { %v1925_v35 = vadd.f32 %v3006_v47, %v2998_v4 }
 0x540   :  { %v1822_v34 = vpop.f32.mrf.mxu0 }
 0x541   :  { %v1920_v36 = vadd.f32 %v1919_v29, %v1822_v34 }
 0x542   :  { %v3001_v51 = vpop.f32.mrf.mxu0 }
 0x543   :  { %v1935_v26 = vadd.f32 %v3009_v50, %v3001_v51 }
 0x544   :  { %v1832_v52 = vpop.f32.mrf.mxu0 }
 0x545   :  { %v1930_v44 = vadd.f32 %v1929_v53, %v1832_v52 }
 0x546   :  { %v3014_v49 = vpop.f32.mrf.mxu0 }
 0x547   :  { %v2036_v33 = vadd.f32 %v3014_v49, %v1925_v35 }
 0x548   :  { %v2016_v11 = vpop.f32.mrf.mxu0 }
 0x549   :  { %v2035_v19 = vadd.f32 %v2016_v11, %v1920_v36 }
 0x54c   :  { %v3017_v10 = vpop.f32.mrf.mxu0 }
 0x54d   :  { %v2038_v45 = vadd.f32 %v3017_v10, %v1935_v26 }
 0x54e   :  { %v3022_v15 = vpop.f32.mrf.mxu1  ;;  %v2026_v43 = vpop.f32.mrf.mxu0 }
 0x54f   :  { %v2137_v28 = vadd.f32 %v3022_v15, %v2036_v33  ;;  %v2037_v46 = vadd.f32 %v2026_v43, %v1930_v44  ;;  %v2207_v33 = vsub.s32 1, %v3298_v9 }
 0x550   :  { %v2117_v18 = vpop.f32.mrf.mxu1 }
 0x551   :  { %v2145_v40 = vadd.f32 %v2143_v38, %v2137_v28  ;;  %v2136_v41 = vadd.f32 %v2117_v18, %v2035_v19  ;;  %v2208_v15 = vrot.slane %v3678_v13, %v2207_v33  ;;  %v2215_v19 = vsub.s32 2, %v3298_v9 }
 0x552   :  { %v2228_v17 = vrot.slane %v3191_v37, %v2207_v33 }
 0x553   :  { %v2144_v27 = vadd.f32 %v2143_v38, %v2136_v41  ;;  %v2149_v21 = vadd.f32 %v2145_v40, %v3286_v5 }
 0x555   :  { %v2155_v25 = vsel %vm44_vm0, %v2149_v21, 0.0  ;;  %v2148_v56 = vadd.f32 %v3188_v39, %v2144_v27  ;;  %v2216_v27 = vrot.slane %v3678_v13, %v2215_v19 }
 0x556   :  { %2156 = vadd.xlane.f32.xlu1 %v2155_v25 }
 0x557   :  { %v2152_v42 = vsel %vm44_vm0, %v2148_v56, 0.0 }
 0x558   :  { %2153 = vadd.xlane.f32.xlu0 %v2152_v42 }
 0x581   :  { %v3025_v24 = vpop.f32.mrf.mxu1 }
 0x582   :  { %v2139_v30 = vadd.f32 %v3025_v24, %v2038_v45 }
 0x583   :  { %v2127_v5 = vpop.f32.mrf.mxu1 }
 0x584   :  { %v2138_v55 = vadd.f32 %v2127_v5, %v2037_v46  ;;  %v2147_v58 = vadd.f32 %v2143_v38, %v2139_v30 }
 0x586   :  { %v2146_v57 = vadd.f32 %v2143_v38, %v2138_v55  ;;  %v2151_v62 = vadd.f32 %v3190_v54, %v2147_v58  ;;  %v2374_v54 = vld [vmem:[%s3835_s4 + $0x60] sm:$0xff] }
 0x588   :  { %v2150_v59 = vadd.f32 %v3189_v48, %v2146_v57  ;;  %v2161_v63 = vsel %vm44_vm0, %v2151_v62, 0.0  ;;  %v2377_v48 = vld [vmem:[%s3835_s4 + $0x78] sm:$0xff] }
 0x589   :  { %3040 = vmatprep.subr.mxu1 %v2377_v48 }
 0x58a   :  { %v2158_v60 = vsel %vm44_vm0, %v2150_v59, 0.0  ;;  %3041 = vmatpush3.msra.mxu1 %v2377_v48 }
 0x58b   :  { %2159 = vadd.xlane.f32.xlu0 %v2158_v60  ;;  %v2375_v60 = vld [vmem:[%s3835_s4 + $0x68] sm:$0xff] }
 0x58f   :  { %2162 = vadd.xlane.f32.xlu0 %v2161_v63  ;;  %v2372_v63 = vld [vmem:[%s3835_s4 + $0x50] sm:$0xff] }
 0x5df   :  { %v2157_v0 = vpop.xlane.xlu1 %2156 }
 0x5e0   :  { %v2166_v61 = vmul.f32 0.03125, %v2157_v0  ;;  %v2371_v0 = vld [vmem:[%s3835_s4 + $0x48] sm:$0xff] }
 0x5e1   :  { %v2154_v2 = vpop.xlane.xlu0 %2153 }
 0x5e2   :  { %v2170_v6 = vsub.f32 %v2149_v21, %v2166_v61  ;;  %v2165_v8 = vmul.f32 0.03125, %v2154_v2  ;;  %v2370_v61 = vld [vmem:[%s3835_s4 + $0x40] sm:$0xff]  ;;  %v2369_v2 = vld [vmem:[%s3835_s4 + $0x38] sm:$0xff] }
 0x5e4   :  { %v2169_v12 = vsub.f32 %v2148_v56, %v2165_v8  ;;  %v2174_v14 = vmul.f32 %v2170_v6, %v2170_v6  ;;  %v2367_v8 = vld [vmem:[%s3835_s4 + $0x28] sm:$0xff] }
 0x5e6   :  { %v2180_v1 = vsel %vm44_vm0, %v2174_v14, 0.0  ;;  %v2173_v31 = vmul.f32 %v2169_v12, %v2169_v12  ;;  %v2365_v14 = vld [vmem:[%s3835_s4 + $0x18] sm:$0xff] }
 0x5e7   :  { %2181 = vadd.xlane.f32.xlu0 %v2180_v1  ;;  %v2364_v1 = vld [vmem:[%s3835_s4 + $0x10] sm:$0xff] }
 0x5e8   :  { %v2177_v16 = vsel %vm44_vm0, %v2173_v31, 0.0  ;;  %v2363_v31 = vld [vmem:[%s3835_s4 + $0x8] sm:$0xff] }
 0x5e9   :  { %2178 = vadd.xlane.f32.xlu1 %v2177_v16  ;;  %v2362_v16 = vld [vmem:[%s3835_s4] sm:$0xff] }
 0x614   :  { %v2160_v7 = vpop.xlane.xlu0 %2159 }
 0x615   :  { %v2167_v22 = vmul.f32 0.03125, %v2160_v7 }
 0x617   :  { %v2171_v32 = vsub.f32 %v2150_v59, %v2167_v22  ;;  %v2376_v59 = vld [vmem:[%s3835_s4 + $0x70] sm:$0xff] }
 0x618   :  { %v2163_v23 = vpop.xlane.xlu0 %2162  ;;  %3042 = vmatprep.subr.mxu1 %v2376_v59 }
 0x619   :  { %v2168_v4 = vmul.f32 0.03125, %v2163_v23  ;;  %v2175_v34 = vmul.f32 %v2171_v32, %v2171_v32  ;;  %3043 = vmatpush3.msra.mxu1 %v2376_v59 }
 0x61a   :  { %3044 = vmatprep.subr.mxu1 %v2375_v60 }
 0x61b   :  { %v2172_v47 = vsub.f32 %v2151_v62, %v2168_v4  ;;  %v2183_v51 = vsel %vm44_vm0, %v2175_v34, 0.0  ;;  %3045 = vmatpush3.msra.mxu1 %v2375_v60  ;;  %v2373_v62 = vld [vmem:[%s3835_s4 + $0x58] sm:$0xff] }
 0x61c   :  { %2184 = vadd.xlane.f32.xlu1 %v2183_v51  ;;  %3046 = vmatprep.subr.mxu1 %v2374_v54 }
 0x61d   :  { %v2176_v52 = vmul.f32 %v2172_v47, %v2172_v47  ;;  %3047 = vmatpush3.msra.mxu1 %v2374_v54 }
 0x61e   :  { %3048 = vmatprep.subr.mxu1 %v2373_v62 }
 0x61f   :  { %v2186_v29 = vsel %vm44_vm0, %v2176_v52, 0.0  ;;  %3049 = vmatpush3.msra.mxu1 %v2373_v62  ;;  %v2380_v62 = vsub.s32 3, %v3298_v9 }
 0x620   :  { %2187 = vadd.xlane.f32.xlu0 %v2186_v29  ;;  %3050 = vmatprep.subr.mxu1 %v2372_v63 }
 0x621   :  { %3051 = vmatpush3.msra.mxu1 %v2372_v63  ;;  %v2381_v63 = vrot.slane %v3678_v13, %v2380_v62 }
 0x622   :  { %3052 = vmatprep.subr.mxu1 %v2371_v0 }
 0x623   :  { %3053 = vmatpush3.msra.mxu1 %v2371_v0 }
 0x624   :  { %3054 = vmatprep.subr.mxu1 %v2370_v61 }
 0x625   :  { %3055 = vmatpush3.msra.mxu1 %v2370_v61 }
 0x626   :  { %3056 = vmatprep.subr.mxu1 %v2369_v2 }
 0x627   :  { %3057 = vmatpush3.msra.mxu1 %v2369_v2 }
 0x670   :  { %v2182_v50 = vpop.xlane.xlu0 %2181 }
 0x671   :  { %v2190_v49 = vmul.f32 0.03125, %v2182_v50 }
 0x672   :  { %v2179_v35 = vpop.xlane.xlu1 %2178 }
 0x673   :  { %v2194_v53 = vadd.f32 1e-05, %v2190_v49  ;;  %v2189_v11 = vmul.f32 0.03125, %v2179_v35 }
 0x675   :  { %3164 = vrsqrt.f32 %v2194_v53  ;;  %v2193_v36 = vadd.f32 1e-05, %v2189_v11 }
 0x677   :  { %3166 = vrsqrt.f32 %v2193_v36 }
 0x682   :  { %v3165_v38 = vpop.eup %3164 }
 0x683   :  { %v2202_v28 = vmul.f32 %v3165_v38, %v2170_v6  ;;  %v2368_v6 = vld [vmem:[%s3835_s4 + $0x30] sm:$0xff] }
 0x684   :  { %v3167_v18 = vpop.eup %3166  ;;  %3058 = vmatprep.subr.mxu1 %v2368_v6 }
 0x685   :  { %v2201_v40 = vmul.f32 %v3167_v18, %v2169_v12  ;;  %v2210_v41 = vmul.f32 %v2208_v15, %v2202_v28  ;;  %3059 = vmatpush3.msra.mxu1 %v2368_v6  ;;  %v2366_v12 = vld [vmem:[%s3835_s4 + $0x20] sm:$0xff] }
 0x686   :  { %3060 = vmatprep.subr.mxu1 %v2367_v8 }
 0x687   :  { %v2209_v21 = vmul.f32 %v2208_v15, %v2201_v40  ;;  %v3721_v39 = vadd.f32 %v2216_v27, %v2210_v41  ;;  %3061 = vmatpush3.msra.mxu1 %v2367_v8 }
 0x688   :  { %3062 = vmatprep.subr.mxu1 %v2366_v12 }
 0x689   :  { %v3719_v25 = vadd.f32 %v2216_v27, %v2209_v21  ;;  %3063 = vmatpush3.msra.mxu1 %v2366_v12 }
 0x68a   :  { %3064 = vmatprep.subr.mxu1 %v2365_v14 }
 0x68b   :  { %3034 = vmatprep.mubr.msk.f32.mxu0 %vm44_vm0, %v3719_v25  ;;  %3065 = vmatpush3.msra.mxu1 %v2365_v14 }
 0x68c   :  { %3035 = vmatmul.mubr.msk.f32.vlgmr.msra.gmra.mxu0 %vm44_vm0, %v3721_v39  ;;  %3066 = vmatprep.subr.mxu1 %v2364_v1 }
 0x68d   :  { %3067 = vmatpush3.msra.mxu1 %v2364_v1 }
 0x68e   :  { %3068 = vmatprep.subr.mxu1 %v2363_v31 }
 0x68f   :  { %3069 = vmatpush3.msra.mxu1 %v2363_v31 }
 0x690   :  { %3070 = vmatprep.subr.mxu1 %v2362_v16 }
 0x691   :  { %3071 = vmatpush3.msra.mxu1 %v2362_v16 }
 0x6a5   :  { %v2185_v56 = vpop.xlane.xlu1 %2184 }
 0x6a6   :  { %v2191_v42 = vmul.f32 0.03125, %v2185_v56 }
 0x6a8   :  { %v2195_v10 = vadd.f32 1e-05, %v2191_v42 }
 0x6a9   :  { %v2188_v26 = vpop.xlane.xlu0 %2187 }
 0x6aa   :  { %3168 = vrsqrt.f32 %v2195_v10  ;;  %v2192_v43 = vmul.f32 0.03125, %v2188_v26 }
 0x6ac   :  { %v2196_v44 = vadd.f32 1e-05, %v2192_v43 }
 0x6ae   :  { %3170 = vrsqrt.f32 %v2196_v44 }
 0x6b7   :  { %v3169_v45 = vpop.eup %3168 }
 0x6b8   :  { %v2203_v24 = vmul.f32 %v3169_v45, %v2171_v32 }
 0x6ba   :  { %v2211_v46 = vmul.f32 %v2208_v15, %v2203_v24 }
 0x6bb   :  { %v3171_v30 = vpop.eup %3170 }
 0x6bc   :  { %v3727_v5 = vadd.f32 %v2216_v27, %v2211_v46  ;;  %v2204_v55 = vmul.f32 %v3171_v30, %v2172_v47 }
 0x6be   :  { %3037 = vmatprep.mubr.msk.f32.mxu0 %vm44_vm0, %v3727_v5  ;;  %v2212_v58 = vmul.f32 %v2208_v15, %v2204_v55 }
 0x6c0   :  { %v3731_v57 = vadd.f32 %v2216_v27, %v2212_v58 }
 0x6c2   :  { %3038 = vmatmul.mubr.msk.f32.gmra.mxu0 %vm44_vm0, %v3731_v57 }
 0x74c   :  { %v3036_v3 = vpop.f32.mrf.mxu0 }
 0x74d   :  { %v2313_v20 = vadd.f32 %v3036_v3, %v2228_v17 }
 0x74e   :  { %v2307_v7 = vpop.f32.mrf.mxu0 }
 0x74f   :  { %v2327_v22 = vmul.f32 %v2313_v20, %v2313_v20  ;;  %v2308_v32 = vadd.f32 %v2307_v7, %v2228_v17 }
 0x751   :  { %v2331_v23 = vmul.f32 %v2327_v22, %v2313_v20  ;;  %v2326_v4 = vmul.f32 %v2308_v32, %v2308_v32 }
 0x753   :  { %v2335_v34 = vmul.f32 0.044715, %v2331_v23  ;;  %v2330_v47 = vmul.f32 %v2326_v4, %v2308_v32 }
 0x755   :  { %v2339_v51 = vadd.f32 %v2335_v34, %v2313_v20  ;;  %v2334_v52 = vmul.f32 0.044715, %v2330_v47 }
 0x757   :  { %v2343_v29 = vmul.f32 0.7978846, %v2339_v51  ;;  %v2338_v50 = vadd.f32 %v2334_v52, %v2308_v32 }
 0x759   :  { %3172 = vtanh.f32 %v2343_v29  ;;  %v2342_v49 = vmul.f32 0.7978846, %v2338_v50  ;;  %v2541_v29 = vld [vmem:[%s3836_s5 + $0x10] sm:$0xff]  ;;  %v2540_v50 = vld [vmem:[%s3836_s5 + $0x8] sm:$0xff] }
 0x75b   :  { %3174 = vtanh.f32 %v2342_v49  ;;  %v2539_v49 = vld [vmem:[%s3836_s5] sm:$0xff] }
 0x766   :  { %v3173_v35 = vpop.eup %3172 }
 0x767   :  { %v2351_v53 = vadd.f32 1.0, %v3173_v35 }
 0x768   :  { %v3175_v11 = vpop.eup %3174 }
 0x769   :  { %v2350_v36 = vadd.f32 1.0, %v3175_v11  ;;  %v2355_v33 = vmul.f32 0.5, %v2351_v53 }
 0x76b   :  { %v2354_v38 = vmul.f32 0.5, %v2350_v36  ;;  %v2359_v19 = vmul.f32 %v2355_v33, %v2313_v20 }
 0x76d   :  { %v2358_v15 = vmul.f32 %v2354_v38, %v2308_v32 }
 0x76f   :  { %3072 = vmatprep.mubr.f32.mxu1 %v2358_v15 }
 0x770   :  { %3073 = vmatmul.mubr.f32.vlgmr.msra.gmra.mxu1 %v2359_v19 }
 0x782   :  { %v3039_v28 = vpop.f32.mrf.mxu0 }
 0x783   :  { %v2323_v18 = vadd.f32 %v3039_v28, %v2228_v17 }
 0x784   :  { %v2317_v40 = vpop.f32.mrf.mxu0 }
 0x785   :  { %v2329_v41 = vmul.f32 %v2323_v18, %v2323_v18  ;;  %v2318_v27 = vadd.f32 %v2317_v40, %v2228_v17 }
 0x787   :  { %v2333_v21 = vmul.f32 %v2329_v41, %v2323_v18  ;;  %v2328_v56 = vmul.f32 %v2318_v27, %v2318_v27 }
 0x789   :  { %v2337_v42 = vmul.f32 0.044715, %v2333_v21  ;;  %v2332_v10 = vmul.f32 %v2328_v56, %v2318_v27 }
 0x78b   :  { %v2341_v26 = vadd.f32 %v2337_v42, %v2323_v18  ;;  %v2336_v43 = vmul.f32 0.044715, %v2332_v10  ;;  %v2525_v10 = vsub.s32 4, %v3298_v9 }
 0x78d   :  { %v2345_v44 = vmul.f32 0.7978846, %v2341_v26  ;;  %v2340_v45 = vadd.f32 %v2336_v43, %v2318_v27  ;;  %v2526_v43 = vrot.slane %v3678_v13, %v2525_v10 }
 0x78f   :  { %3176 = vtanh.f32 %v2345_v44  ;;  %v2344_v24 = vmul.f32 0.7978846, %v2340_v45  ;;  %v2533_v44 = vsub.s32 5, %v3298_v9 }
 0x791   :  { %3178 = vtanh.f32 %v2344_v24 }
 0x79c   :  { %v3177_v46 = vpop.eup %3176 }
 0x79d   :  { %v2353_v30 = vadd.f32 1.0, %v3177_v46 }
 0x79e   :  { %v3179_v55 = vpop.eup %3178 }
 0x79f   :  { %v2352_v58 = vadd.f32 1.0, %v3179_v55  ;;  %v2357_v48 = vmul.f32 0.5, %v2353_v30  ;;  %v2534_v55 = vrot.slane %v3678_v13, %v2533_v44 }
 0x7a1   :  { %v2356_v59 = vmul.f32 0.5, %v2352_v58  ;;  %v2361_v54 = vmul.f32 %v2357_v48, %v2323_v18 }
 0x7a3   :  { %v2360_v60 = vmul.f32 %v2356_v59, %v2318_v27 }
 0x7a5   :  { %3075 = vmatprep.mubr.f32.mxu1 %v2360_v60 }
 0x7a6   :  { %3076 = vmatmul.mubr.f32.gmra.mxu1 %v2361_v54 }
 0x830   :  { %v3074_v0 = vpop.f32.mrf.mxu1 }
 0x831   :  { %v2454_v61 = vadd.f32 %v3074_v0, %v2381_v63 }
 0x832   :  { %v2448_v2 = vpop.f32.mrf.mxu1 }
 0x833   :  { %v2449_v6 = vadd.f32 %v2448_v2, %v2381_v63  ;;  %v2468_v8 = vadd.f32 %v2454_v61, %v3721_v39 }
 0x835   :  { %v2474_v12 = vsel %vm44_vm0, %v2468_v8, 0.0  ;;  %v2467_v14 = vadd.f32 %v2449_v6, %v3719_v25 }
 0x836   :  { %2475 = vadd.xlane.f32.xlu0 %v2474_v12 }
 0x837   :  { %v2471_v1 = vsel %vm44_vm0, %v2467_v14, 0.0 }
 0x838   :  { %2472 = vadd.xlane.f32.xlu1 %v2471_v1 }
 0x866   :  { %v3077_v31 = vpop.f32.mrf.mxu1 }
 0x867   :  { %v2464_v16 = vadd.f32 %v3077_v31, %v2381_v63 }
 0x868   :  { %v2458_v37 = vpop.f32.mrf.mxu1 }
 0x869   :  { %v2459_v17 = vadd.f32 %v2458_v37, %v2381_v63  ;;  %v2470_v3 = vadd.f32 %v2464_v16, %v3731_v57  ;;  %v2545_v37 = vsub.s32 6, %v3298_v9 }
 0x86b   :  { %v2480_v20 = vsel %vm44_vm0, %v2470_v3, 0.0  ;;  %v2469_v7 = vadd.f32 %v2459_v17, %v3727_v5  ;;  %v2542_v5 = vld [vmem:[%s3836_s5 + $0x18] sm:$0xff]  ;;  %v2546_v17 = vrot.slane %v3678_v13, %v2545_v37  ;;  %s3219_s5 = smov [#allocation2]  }
 0x86c   :  { %2481 = vadd.xlane.f32.xlu0 %v2480_v20  ;;  %3078 = vmatprep.subr.mxu0 %v2542_v5  ;;  %s2653_s7 = sshll.u32 %s3219_s5, 4  ;;  %s2654_s7 = int_to_ptr.vmem [resolvable:$true] %s2653_s7 }
 0x86d   :  { %v2477_v39 = vsel %vm44_vm0, %v2469_v7, 0.0  ;;  %3079 = vmatpush3.msra.mxu0 %v2542_v5  ;;  %s3192_s14 = scalar_lea.vmem %s2654_s7, 512  ;;  %p3197_p1 = scmp.lt.s32.totalorder %s2654_s7, %s2654_s7 }
 0x86e   :  { %2478 = vadd.xlane.f32.xlu1 %v2477_v39  ;;  %3080 = vmatprep.subr.mxu0 %v2541_v29  ;;  %p3193_p0 = scmp.ne.s32.totalorder %s2654_s7, %s3192_s14  ;;  %p3198_p2 = scmp.lt.s32.totalorder %s3192_s14, %s3192_s14 }
 0x86f   :  { %3081 = vmatpush3.msra.mxu0 %v2541_v29 }
 0x870   :  { %3082 = vmatprep.subr.mxu0 %v2540_v50  ;;  %p3199_p3 = por %p3198_p2, %p3197_p1 }
 0x871   :  { %3083 = vmatpush3.msra.mxu0 %v2540_v50 }
 0x872   :  { %3084 = vmatprep.subr.mxu0 %v2539_v49  ;;  %p3200_p4 = pnand %p3199_p3, %p3193_p0 }
 0x873   :  { %3085 = vmatpush3.msra.mxu0 %v2539_v49 }
 0x8bf   :  { %v2476_v22 = vpop.xlane.xlu0 %2475 }
 0x8c0   :  { %v2484_v25 = vmul.f32 0.03125, %v2476_v22 }
 0x8c1   :  { %v2473_v32 = vpop.xlane.xlu1 %2472 }
 0x8c2   :  { %v2488_v23 = vsub.f32 %v2468_v8, %v2484_v25  ;;  %v2483_v4 = vmul.f32 0.03125, %v2473_v32 }
 0x8c4   :  { %v2487_v34 = vsub.f32 %v2467_v14, %v2483_v4  ;;  %v2492_v47 = vmul.f32 %v2488_v23, %v2488_v23 }
 0x8c6   :  { %v2498_v51 = vsel %vm44_vm0, %v2492_v47, 0.0  ;;  %v2491_v52 = vmul.f32 %v2487_v34, %v2487_v34 }
 0x8c7   :  { %2499 = vadd.xlane.f32.xlu0 %v2498_v51 }
 0x8c8   :  { %v2495_v57 = vsel %vm44_vm0, %v2491_v52, 0.0 }
 0x8c9   :  { %2496 = vadd.xlane.f32.xlu1 %v2495_v57 }
 0x8f5   :  { %v2482_v35 = vpop.xlane.xlu0 %2481 }
 0x8f6   :  { %v2486_v53 = vmul.f32 0.03125, %v2482_v35 }
 0x8f7   :  { %v2479_v11 = vpop.xlane.xlu1 %2478 }
 0x8f8   :  { %v2490_v36 = vsub.f32 %v2470_v3, %v2486_v53  ;;  %v2485_v33 = vmul.f32 0.03125, %v2479_v11 }
 0x8fa   :  { %v2489_v38 = vsub.f32 %v2469_v7, %v2485_v33  ;;  %v2494_v15 = vmul.f32 %v2490_v36, %v2490_v36 }
 0x8fc   :  { %v2504_v19 = vsel %vm44_vm0, %v2494_v15, 0.0  ;;  %v2493_v28 = vmul.f32 %v2489_v38, %v2489_v38 }
 0x8fd   :  { %2505 = vadd.xlane.f32.xlu0 %v2504_v19 }
 0x8fe   :  { %v2501_v18 = vsel %vm44_vm0, %v2493_v28, 0.0 }
 0x8ff   :  { %2502 = vadd.xlane.f32.xlu1 %v2501_v18 }
 0x950   :  { %v2500_v40 = vpop.xlane.xlu0 %2499 }
 0x951   :  { %v2508_v41 = vmul.f32 0.03125, %v2500_v40 }
 0x952   :  { %v2497_v27 = vpop.xlane.xlu1 %2496 }
 0x953   :  { %v2512_v21 = vadd.f32 1e-05, %v2508_v41  ;;  %v2507_v56 = vmul.f32 0.03125, %v2497_v27 }
 0x955   :  { %3180 = vrsqrt.f32 %v2512_v21  ;;  %v2511_v42 = vadd.f32 1e-05, %v2507_v56 }
 0x957   :  { %3182 = vrsqrt.f32 %v2511_v42 }
 0x962   :  { %v3181_v26 = vpop.eup %3180 }
 0x963   :  { %v2520_v45 = vmul.f32 %v3181_v26, %v2488_v23 }
 0x964   :  { %v3183_v24 = vpop.eup %3182 }
 0x965   :  { %v2519_v46 = vmul.f32 %v3183_v24, %v2487_v34  ;;  %v2528_v30 = vmul.f32 %v2526_v43, %v2520_v45 }
 0x967   :  { %v2527_v58 = vmul.f32 %v2526_v43, %v2519_v46  ;;  %v2536_v59 = vadd.f32 %v2534_v55, %v2528_v30 }
 0x969   :  { %v2535_v48 = vadd.f32 %v2534_v55, %v2527_v58 }
 0x96b   :  { %3086 = vmatprep.mubr.msk.f32.mxu0 %vm44_vm0, %v2535_v48 }
 0x96c   :  { %3087 = vmatmul.mubr.msk.f32.vlgmr.msra.gmra.mxu0 %vm44_vm0, %v2536_v59 }
 0x986   :  { %v2506_v60 = vpop.xlane.xlu0 %2505 }
 0x987   :  { %v2510_v54 = vmul.f32 0.03125, %v2506_v60 }
 0x988   :  { %v2503_v62 = vpop.xlane.xlu1 %2502 }
 0x989   :  { %v2514_v63 = vadd.f32 1e-05, %v2510_v54  ;;  %v2509_v0 = vmul.f32 0.03125, %v2503_v62 }
 0x98b   :  { %3184 = vrsqrt.f32 %v2514_v63  ;;  %v2513_v61 = vadd.f32 1e-05, %v2509_v0 }
 0x98d   :  { %3186 = vrsqrt.f32 %v2513_v61 }
 0x998   :  { %v3185_v2 = vpop.eup %3184 }
 0x999   :  { %v2522_v6 = vmul.f32 %v3185_v2, %v2490_v36 }
 0x99a   :  { %v3187_v8 = vpop.eup %3186 }
 0x99b   :  { %v2521_v12 = vmul.f32 %v3187_v8, %v2489_v38  ;;  %v2530_v14 = vmul.f32 %v2526_v43, %v2522_v6 }
 0x99d   :  { %v2529_v1 = vmul.f32 %v2526_v43, %v2521_v12  ;;  %v2538_v16 = vadd.f32 %v2534_v55, %v2530_v14 }
 0x99f   :  { %v2537_v31 = vadd.f32 %v2534_v55, %v2529_v1 }
 0x9a1   :  { %3089 = vmatprep.mubr.msk.f32.mxu0 %vm44_vm0, %v2537_v31 }
 0x9a2   :  { %3090 = vmatmul.mubr.msk.f32.gmra.mxu0 %vm44_vm0, %v2538_v16 }
 0xa2c   :  { %v3088_v3 = vpop.f32.mrf.mxu0 }
 0xa2d   :  { %v2631_v20 = vadd.f32 %v3088_v3, %v2546_v17 }
 0xa2e   :  { %v2625_v7 = vpop.f32.mrf.mxu0 }
 0xa2f   :  { %2645 = vst.msk [vmem:[#allocation2 + $0x8] sm:$0xff] %vm44_vm0, %v2631_v20  ;;  %v2626_v39 = vadd.f32 %v2625_v7, %v2546_v17 }
 0xa31   :  { %2644 = vst.msk [vmem:[#allocation2] sm:$0xff] %vm44_vm0, %v2626_v39 }
 0xa62   :  { %v3091_v22 = vpop.f32.mrf.mxu0 }
 0xa63   :  { %v2641_v25 = vadd.f32 %v3091_v22, %v2546_v17 }
 0xa64   :  { %v2635_v32 = vpop.f32.mrf.mxu0 }
 0xa65   :  { %2647 = vst.msk [vmem:[#allocation2 + $0x18] sm:$0xff] %vm44_vm0, %v2641_v25  ;;  %v2636_v23 = vadd.f32 %v2635_v32, %v2546_v17 }
 0xa67   :  { %2646 = vst.msk [vmem:[#allocation2 + $0x10] sm:$0xff] %vm44_vm0, %v2636_v23 }
 0xa68   :  { %3203 = shalt.err (!%p3200_p4)
}
 0xa69   :  { %s3220_s15 = smov 128   ;;  %s3221_s16 = smov 8  }
 0xa6a   :  { %2659 = dma.vmem_to_hbm [thread:$0]  %s2654_s7, 512, %s3839_s8, [#allocation3], %s3220_s15, %s3220_s15, %s3221_s16  }
 0xa6b   :  { %3212 = dma.done.wait [#allocation3], 512  }
 0xa6c   :  { %3213 = vsyncadd [#allocation3], 4294966784 }
 0xa6d   :  { %2663 = vsyncpa [#allocation3], 1 }

</bundles_post_ra>
